<compile_context>
chip_gen: v7x
topology: tpu7x:2x2x1
jax: 0.10.0
libtpu: 0.0.40
codegen_flags: <defaults>
</compile_context>

<pallas_src>
import numpy as np
from math import comb

import jax
import jax.numpy as jnp
from jax.experimental import pallas as pl
from jax.experimental.pallas import tpu as pltpu

LANE = 128  # TPU vreg lane width


# --------------------- Daubechies filter banks (pywt-compatible) --------------
def daubechies_filters(n):
    """(dec_lo, dec_hi, rec_lo, rec_hi) for wavelet 'db<n>', float64."""
    P = np.array([comb(n - 1 + k, k) for k in range(n)], dtype=np.float64)
    yroots = np.roots(P[::-1]) if n > 1 else np.array([])
    zroots = []
    for y in yroots:
        c = 2.0 - 4.0 * y
        disc = np.sqrt(c * c - 4.0 + 0j)
        z1, z2 = (c + disc) / 2.0, (c - disc) / 2.0
        zroots.append(z1 if abs(z1) < 1.0 else z2)   # minimum phase
    poly = np.array([1.0 + 0j])
    for _ in range(n):
        poly = np.convolve(poly, [1.0, 1.0])
    for z in zroots:
        poly = np.convolve(poly, [1.0, -z])
    rec_lo = np.real(poly)
    rec_lo = rec_lo * (np.sqrt(2.0) / rec_lo.sum())
    dec_lo = rec_lo[::-1].copy()
    k = np.arange(len(rec_lo))
    rec_hi = ((-1.0) ** k) * dec_lo
    dec_hi = rec_hi[::-1].copy()
    return dec_lo, dec_hi, rec_lo, rec_hi


def _symmetric_pad_indices(n, pad_l, pad_r):
    """pywt / pytorch_wavelets 'symmetric' (half-sample) padding gather indices."""
    xs = np.arange(-pad_l, n + pad_r, dtype=np.float64)
    minx, maxx = -0.5, n - 0.5
    rng = maxx - minx
    rng2 = 2.0 * rng
    mod = np.fmod(xs - minx, rng2)
    mod = np.where(mod < 0, mod + rng2, mod)
    out = np.where(mod >= rng, rng2 - mod, mod) + minx
    return np.round(out).astype(np.int64)


# --------------------- dense single-level DWT / IDWT operators ----------------
def _analysis_matrices(n, dec_lo, dec_hi):
    """One 'symmetric'-mode DWT level as dense matrices: approx = x @ lo, detail = x @ hi."""
    L = len(dec_lo)
    out_len = (n + L - 1) // 2                       # pywt dwt_coeff_len
    p = 2 * (out_len - 1) - n + L
    sym = _symmetric_pad_indices(n, p // 2, (p + 1) // 2)
    lo = np.zeros((n, out_len), np.float64)
    hi = np.zeros((n, out_len), np.float64)
    for k in range(out_len):
        for s in range(L):
            src = int(sym[2 * k + s])
            lo[src, k] += dec_lo[L - 1 - s]
            hi[src, k] += dec_hi[L - 1 - s]
    return lo, hi, out_len


def _synthesis_matrices(n_coef, rec_lo, rec_hi):
    """One IDWT level (pytorch_wavelets sfb1d: conv_transpose, stride 2, pad L-2)
       as dense matrices: rec = a @ lo + d @ hi, output length 2*n + 2 - L."""
    L = len(rec_lo)
    out_len = 2 * n_coef + 2 - L
    lo = np.zeros((n_coef, out_len), np.float64)
    hi = np.zeros((n_coef, out_len), np.float64)
    for i in range(n_coef):
        for k in range(out_len):
            t = L - 2 - 2 * i + k
            if 0 <= t < L:
                lo[i, k] = rec_lo[t]
                hi[i, k] = rec_hi[t]
    return lo, hi, out_len


def _build_expert_operators(filters, level, size):
    """Per expert: AL, DL (analysis to coarsest approx/detail), SA, SD (synthesis
       of the two mixed coefficient sets, full chain incl. the 'unpad' crops),
       P (all pass-through finer-detail levels folded into one x->output matrix)."""
    ops = []
    for dec_lo, dec_hi, rec_lo, rec_hi in filters:
        ns = [size]
        Alo, Ahi = [], []
        for _ in range(level):
            lo, hi, out_len = _analysis_matrices(ns[-1], dec_lo, dec_hi)
            Alo.append(lo)
            Ahi.append(hi)
            ns.append(out_len)
        Acum = [np.eye(size)]
        for j in range(level):
            Acum.append(Acum[-1] @ Alo[j])
        modes = ns[level]
        AL = Acum[level]                              # (size, modes)
        DL = Acum[level - 1] @ Ahi[level - 1]         # (size, modes)

        # Synthesis chain, coarsest -> finest, tracking where each source lands.
        SA = np.eye(modes)                            # mixed approx   -> current ll
        SD = np.zeros((modes, modes))                 # mixed detail_L -> current ll
        P = np.zeros((size, modes))                   # raw x (pass-through) -> ll
        ll_len = modes
        for j in range(level, 0, -1):
            nj = ns[j]
            if ll_len > nj:                           # pytorch_wavelets 'unpad' (drop last)
                SA, SD, P = SA[:, :nj], SD[:, :nj], P[:, :nj]
                ll_len = nj
            assert ll_len == nj
            SynLo, SynHi, r = _synthesis_matrices(nj, rec_lo, rec_hi)
            SA, SD, P = SA @ SynLo, SD @ SynLo, P @ SynLo
            if j == level:
                SD = SD + SynHi                       # mixed coarsest detail enters here
            else:
                Dj = Acum[j - 1] @ Ahi[j - 1]         # pass-through detail at level j
                P = P + Dj @ SynHi
            ll_len = r
        ops.append(dict(AL=AL, DL=DL, SA=SA, SD=SD, P=P, modes=modes, nf=ll_len))
    return ops


# --------------------- fused Pallas kernel ------------------------------------
def _expert_wno_kernel(lam_ref, x_ref, a_ref, d_ref, w1_ref, w2_ref,
                       sa_ref, sd_ref, p_ref, out_ref):
    b = pl.program_id(0)
    e = pl.program_id(1)

    x = x_ref[...]                                                       # (C, N)

    # Wavelet analysis to the coarsest level: dense operators on the MXU.
    a = jnp.dot(x, a_ref[...], preferred_element_type=jnp.float32)       # (C, Mp)
    d = jnp.dot(x, d_ref[...], preferred_element_type=jnp.float32)       # (C, Mp)

    # Channel mixing out[o,m] = sum_i in[i,m] * W[i,o,m]:
    # Ci-unrolled accumulate -> VPU FMAs only, no cross-sublane reduction and no
    # (Ci,Co,Mp) intermediate kept live.
    Ci = x.shape[0]
    ma = jnp.zeros_like(a)
    md = jnp.zeros_like(d)
    for i in range(Ci):                               # trace-time unrolled (Ci small)
        ma = ma + a[i:i + 1, :] * w1_ref[i]           # (1,Mp) * (Co,Mp)
        md = md + d[i:i + 1, :] * w2_ref[i]

    # Wavelet synthesis + folded pass-through details: dense operators on the MXU.
    y = jnp.dot(ma, sa_ref[...], preferred_element_type=jnp.float32)     # (C, Nf)
    y = y + jnp.dot(md, sd_ref[...], preferred_element_type=jnp.float32)
    y = y + jnp.dot(x, p_ref[...], preferred_element_type=jnp.float32)

    # Lambda-gated expert mixture: accumulate into the resident output block.
    lam = lam_ref[b, e]                               # scalar read from SMEM

    @pl.when(e == 0)
    def _():
        out_ref[...] = jnp.zeros_like(out_ref)

    out_ref[...] += lam * y


# --------------------- Expert_WNO: params + forward ---------------------------
def init_expert_wno(key, level, width, expert_num, size):
    assert expert_num == 10, "Expert_WNO hard-codes 10 experts (db1..db10)"
    filters = [daubechies_filters(i + 1) for i in range(expert_num)]
    ops = _build_expert_operators(filters, level, size)

    nf = ops[0]["nf"]
    assert all(o["nf"] == nf for o in ops), "experts reconstruct to different lengths"
    modes = np.array([o["modes"] for o in ops], np.int64)
    Mmax = int(modes.max())
    Mp = max(LANE, ((Mmax + LANE - 1) // LANE) * LANE)   # lane-dense coefficient width

    E, C = expert_num, width
    A = np.zeros((E, size, Mp), np.float32)
    D = np.zeros((E, size, Mp), np.float32)
    SA = np.zeros((E, Mp, nf), np.float32)
    SD = np.zeros((E, Mp, nf), np.float32)
    P = np.zeros((E, size, nf), np.float32)
    for e, o in enumerate(ops):
        m = o["modes"]
        A[e, :, :m] = o["AL"]
        D[e, :, :m] = o["DL"]
        SA[e, :m, :] = o["SA"]
        SD[e, :m, :] = o["SD"]
        P[e, :, :] = o["P"]

    # Learned mixing weights, torch layout (in, out, modes), zero-padded to Mp lanes
    # (zero weights on padded modes keep those lanes inert end-to-end).
    scale = 1.0 / (width * width)
    W1 = np.zeros((E, C, C, Mp), np.float32)
    W2 = np.zeros((E, C, C, Mp), np.float32)
    for e in range(E):
        key, k1, k2 = jax.random.split(key, 3)
        m = int(modes[e])
        W1[e, :, :, :m] = scale * np.asarray(jax.random.uniform(k1, (C, C, m), jnp.float32))
        W2[e, :, :, :m] = scale * np.asarray(jax.random.uniform(k2, (C, C, m), jnp.float32))

    return dict(level=level, width=width, expert_num=expert_num, size=size,
                nf=nf, Mp=Mp, modes=modes,
                A=jnp.asarray(A), D=jnp.asarray(D), SA=jnp.asarray(SA),
                SD=jnp.asarray(SD), P=jnp.asarray(P),
                W1=jnp.asarray(W1), W2=jnp.asarray(W2))


def expert_wno_forward(params, x, lambda_):
    B, C, N = x.shape
    E = params["expert_num"]
    Mp, nf = params["Mp"], params["nf"]
    assert N == params["size"]

    lam = lambda_[:, 0, :].astype(jnp.float32)        # (B, E) gate weights -> SMEM

    out = pl.pallas_call(
        _expert_wno_kernel,
        out_shape=jax.ShapeDtypeStruct((B, C, nf), jnp.float32),
        grid=(B, E),
        in_specs=[
            pl.BlockSpec(memory_space=pltpu.MemorySpace.SMEM),            # lambda (B, E)
            pl.BlockSpec((None, C, N), lambda b, e: (b, 0, 0)),           # x
            pl.BlockSpec((None, N, Mp), lambda b, e: (e, 0, 0)),          # AL
            pl.BlockSpec((None, N, Mp), lambda b, e: (e, 0, 0)),          # DL
            pl.BlockSpec((None, C, C, Mp), lambda b, e: (e, 0, 0, 0)),    # W1
            pl.BlockSpec((None, C, C, Mp), lambda b, e: (e, 0, 0, 0)),    # W2
            pl.BlockSpec((None, Mp, nf), lambda b, e: (e, 0, 0)),         # SA
            pl.BlockSpec((None, Mp, nf), lambda b, e: (e, 0, 0)),         # SD
            pl.BlockSpec((None, N, nf), lambda b, e: (e, 0, 0)),          # P (pass-through)
        ],
        out_specs=pl.BlockSpec((None, C, nf), lambda b, e: (b, 0, 0)),
        compiler_params=pltpu.CompilerParams(
            dimension_semantics=("parallel", "arbitrary"),   # b across cores, e = reduction
            vmem_limit_bytes=8 * 1024 * 1024),               # ~0.5 MiB/step actually used
    )(lam, x.astype(jnp.float32),
      params["A"], params["D"], params["W1"], params["W2"],
      params["SA"], params["SD"], params["P"])
    return out.astype(x.dtype)


# --------------------- demo ----------------------------------------------------
if __name__ == "__main__":
    LEVEL, WIDTH, EXPERTS, SIZE, BATCH = 2, 8, 10, 64, 2

    key = jax.random.PRNGKey(0)
    kp, kx, kl = jax.random.split(key, 3)

    params = init_expert_wno(kp, LEVEL, WIDTH, EXPERTS, SIZE)
    x = jax.random.normal(kx, (BATCH, WIDTH, SIZE), dtype=jnp.float32)
    lambda_ = jax.nn.softmax(
        jax.random.normal(kl, (BATCH, 1, EXPERTS), dtype=jnp.float32), axis=-1)

    fwd = jax.jit(lambda xx, ll: expert_wno_forward(params, xx, ll))
    out = jax.block_until_ready(fwd(x, lambda_))

    assert out.shape == (BATCH, WIDTH, SIZE), out.shape
    assert out.dtype == jnp.float32
    assert bool(jnp.all(jnp.isfinite(out)))
    print("KERNEL_OK")
</pallas_src>

<mosaic_0001>
module attributes {stable_mosaic.version = 11 : i64} {
  func.func @_expert_wno_kernel(%arg0: i32, %arg1: i32, %arg2: memref<2x10xf32, #tpu.memory_space<smem>>, %arg3: memref<1x8x64xf32, #tpu.memory_space<vmem>>, %arg4: memref<1x64x128xf32, #tpu.memory_space<vmem>>, %arg5: memref<1x64x128xf32, #tpu.memory_space<vmem>>, %arg6: memref<1x8x8x128xf32, #tpu.memory_space<vmem>>, %arg7: memref<1x8x8x128xf32, #tpu.memory_space<vmem>>, %arg8: memref<1x128x64xf32, #tpu.memory_space<vmem>>, %arg9: memref<1x128x64xf32, #tpu.memory_space<vmem>>, %arg10: memref<1x64x64xf32, #tpu.memory_space<vmem>>, %arg11: memref<1x8x64xf32, #tpu.memory_space<vmem>>) attributes {dimension_semantics = [#tpu.dimension_semantics<parallel>, #tpu.dimension_semantics<arbitrary>], iteration_bounds = array<i64: 2, 10>, scalar_prefetch = 0 : i64, scratch_operands = 0 : i64, tpu.core_type = #tpu.core_type<tc>, window_params = [{transform_indices = @transform_0, window_bounds = array<i64: 2, 10>}, {transform_indices = @transform_1, window_bounds = array<i64: 1, 8, 64>}, {transform_indices = @transform_2, window_bounds = array<i64: 1, 64, 128>}, {transform_indices = @transform_3, window_bounds = array<i64: 1, 64, 128>}, {transform_indices = @transform_4, window_bounds = array<i64: 1, 8, 8, 128>}, {transform_indices = @transform_5, window_bounds = array<i64: 1, 8, 8, 128>}, {transform_indices = @transform_6, window_bounds = array<i64: 1, 128, 64>}, {transform_indices = @transform_7, window_bounds = array<i64: 1, 128, 64>}, {transform_indices = @transform_8, window_bounds = array<i64: 1, 64, 64>}, {transform_indices = @transform_9, window_bounds = array<i64: 1, 8, 64>}]} {
    %c0 = arith.constant 0 : index
    %c0_0 = arith.constant 0 : index
    %c0_1 = arith.constant 0 : index
    %0 = vector.load %arg3[%c0, %c0_0, %c0_1] : memref<1x8x64xf32, #tpu.memory_space<vmem>>, vector<1x8x64xf32>
    %1 = vector.shape_cast %0 : vector<1x8x64xf32> to vector<8x64xf32>
    %c0_2 = arith.constant 0 : index
    %c0_3 = arith.constant 0 : index
    %c0_4 = arith.constant 0 : index
    %2 = vector.load %arg4[%c0_2, %c0_3, %c0_4] : memref<1x64x128xf32, #tpu.memory_space<vmem>>, vector<1x64x128xf32>
    %3 = vector.shape_cast %2 : vector<1x64x128xf32> to vector<64x128xf32>
    %cst = arith.constant dense<0.000000e+00> : vector<8x128xf32>
    %4 = tpu.matmul %1, %3, %cst {dimension_numbers = #tpu.dot_dimension_numbers<[1], [0], [0], [1], [0, 0, 1, 1], [], []>} : vector<8x64xf32>, vector<64x128xf32>, vector<8x128xf32> -> vector<8x128xf32>
    %c0_5 = arith.constant 0 : index
    %c0_6 = arith.constant 0 : index
    %c0_7 = arith.constant 0 : index
    %5 = vector.load %arg5[%c0_5, %c0_6, %c0_7] : memref<1x64x128xf32, #tpu.memory_space<vmem>>, vector<1x64x128xf32>
    %6 = vector.shape_cast %5 : vector<1x64x128xf32> to vector<64x128xf32>
    %cst_8 = arith.constant dense<0.000000e+00> : vector<8x128xf32>
    %7 = tpu.matmul %1, %6, %cst_8 {dimension_numbers = #tpu.dot_dimension_numbers<[1], [0], [0], [1], [0, 0, 1, 1], [], []>} : vector<8x64xf32>, vector<64x128xf32>, vector<8x128xf32> -> vector<8x128xf32>
    %cst_9 = arith.constant 0.000000e+00 : f32
    %8 = vector.broadcast %cst_9 : f32 to vector<8x128xf32>
    %cst_10 = arith.constant 0.000000e+00 : f32
    %9 = vector.broadcast %cst_10 : f32 to vector<8x128xf32>
    %10 = vector.extract_strided_slice %4 {offsets = [0, 0], sizes = [1, 128], strides = [1, 1]} : vector<8x128xf32> to vector<1x128xf32>
    %c0_11 = arith.constant 0 : index
    %c0_12 = arith.constant 0 : index
    %c0_13 = arith.constant 0 : index
    %c0_14 = arith.constant 0 : index
    %11 = vector.load %arg6[%c0_11, %c0_12, %c0_13, %c0_14] : memref<1x8x8x128xf32, #tpu.memory_space<vmem>>, vector<1x1x8x128xf32>
    %12 = vector.shape_cast %11 : vector<1x1x8x128xf32> to vector<8x128xf32>
    %13 = vector.broadcast %10 : vector<1x128xf32> to vector<8x128xf32>
    %14 = arith.mulf %13, %12 : vector<8x128xf32>
    %15 = arith.addf %8, %14 : vector<8x128xf32>
    %16 = vector.extract_strided_slice %7 {offsets = [0, 0], sizes = [1, 128], strides = [1, 1]} : vector<8x128xf32> to vector<1x128xf32>
    %c0_15 = arith.constant 0 : index
    %c0_16 = arith.constant 0 : index
    %c0_17 = arith.constant 0 : index
    %c0_18 = arith.constant 0 : index
    %17 = vector.load %arg7[%c0_15, %c0_16, %c0_17, %c0_18] : memref<1x8x8x128xf32, #tpu.memory_space<vmem>>, vector<1x1x8x128xf32>
    %18 = vector.shape_cast %17 : vector<1x1x8x128xf32> to vector<8x128xf32>
    %19 = vector.broadcast %16 : vector<1x128xf32> to vector<8x128xf32>
    %20 = arith.mulf %19, %18 : vector<8x128xf32>
    %21 = arith.addf %9, %20 : vector<8x128xf32>
    %22 = vector.extract_strided_slice %4 {offsets = [1, 0], sizes = [1, 128], strides = [1, 1]} : vector<8x128xf32> to vector<1x128xf32>
    %c0_19 = arith.constant 0 : index
    %c1 = arith.constant 1 : index
    %c0_20 = arith.constant 0 : index
    %c0_21 = arith.constant 0 : index
    %23 = vector.load %arg6[%c0_19, %c1, %c0_20, %c0_21] : memref<1x8x8x128xf32, #tpu.memory_space<vmem>>, vector<1x1x8x128xf32>
    %24 = vector.shape_cast %23 : vector<1x1x8x128xf32> to vector<8x128xf32>
    %25 = vector.broadcast %22 : vector<1x128xf32> to vector<8x128xf32>
    %26 = arith.mulf %25, %24 : vector<8x128xf32>
    %27 = arith.addf %15, %26 : vector<8x128xf32>
    %28 = vector.extract_strided_slice %7 {offsets = [1, 0], sizes = [1, 128], strides = [1, 1]} : vector<8x128xf32> to vector<1x128xf32>
    %c0_22 = arith.constant 0 : index
    %c1_23 = arith.constant 1 : index
    %c0_24 = arith.constant 0 : index
    %c0_25 = arith.constant 0 : index
    %29 = vector.load %arg7[%c0_22, %c1_23, %c0_24, %c0_25] : memref<1x8x8x128xf32, #tpu.memory_space<vmem>>, vector<1x1x8x128xf32>
    %30 = vector.shape_cast %29 : vector<1x1x8x128xf32> to vector<8x128xf32>
    %31 = vector.broadcast %28 : vector<1x128xf32> to vector<8x128xf32>
    %32 = arith.mulf %31, %30 : vector<8x128xf32>
    %33 = arith.addf %21, %32 : vector<8x128xf32>
    %34 = vector.extract_strided_slice %4 {offsets = [2, 0], sizes = [1, 128], strides = [1, 1]} : vector<8x128xf32> to vector<1x128xf32>
    %c0_26 = arith.constant 0 : index
    %c2 = arith.constant 2 : index
    %c0_27 = arith.constant 0 : index
    %c0_28 = arith.constant 0 : index
    %35 = vector.load %arg6[%c0_26, %c2, %c0_27, %c0_28] : memref<1x8x8x128xf32, #tpu.memory_space<vmem>>, vector<1x1x8x128xf32>
    %36 = vector.shape_cast %35 : vector<1x1x8x128xf32> to vector<8x128xf32>
    %37 = vector.broadcast %34 : vector<1x128xf32> to vector<8x128xf32>
    %38 = arith.mulf %37, %36 : vector<8x128xf32>
    %39 = arith.addf %27, %38 : vector<8x128xf32>
    %40 = vector.extract_strided_slice %7 {offsets = [2, 0], sizes = [1, 128], strides = [1, 1]} : vector<8x128xf32> to vector<1x128xf32>
    %c0_29 = arith.constant 0 : index
    %c2_30 = arith.constant 2 : index
    %c0_31 = arith.constant 0 : index
    %c0_32 = arith.constant 0 : index
    %41 = vector.load %arg7[%c0_29, %c2_30, %c0_31, %c0_32] : memref<1x8x8x128xf32, #tpu.memory_space<vmem>>, vector<1x1x8x128xf32>
    %42 = vector.shape_cast %41 : vector<1x1x8x128xf32> to vector<8x128xf32>
    %43 = vector.broadcast %40 : vector<1x128xf32> to vector<8x128xf32>
    %44 = arith.mulf %43, %42 : vector<8x128xf32>
    %45 = arith.addf %33, %44 : vector<8x128xf32>
    %46 = vector.extract_strided_slice %4 {offsets = [3, 0], sizes = [1, 128], strides = [1, 1]} : vector<8x128xf32> to vector<1x128xf32>
    %c0_33 = arith.constant 0 : index
    %c3 = arith.constant 3 : index
    %c0_34 = arith.constant 0 : index
    %c0_35 = arith.constant 0 : index
    %47 = vector.load %arg6[%c0_33, %c3, %c0_34, %c0_35] : memref<1x8x8x128xf32, #tpu.memory_space<vmem>>, vector<1x1x8x128xf32>
    %48 = vector.shape_cast %47 : vector<1x1x8x128xf32> to vector<8x128xf32>
    %49 = vector.broadcast %46 : vector<1x128xf32> to vector<8x128xf32>
    %50 = arith.mulf %49, %48 : vector<8x128xf32>
    %51 = arith.addf %39, %50 : vector<8x128xf32>
    %52 = vector.extract_strided_slice %7 {offsets = [3, 0], sizes = [1, 128], strides = [1, 1]} : vector<8x128xf32> to vector<1x128xf32>
    %c0_36 = arith.constant 0 : index
    %c3_37 = arith.constant 3 : index
    %c0_38 = arith.constant 0 : index
    %c0_39 = arith.constant 0 : index
    %53 = vector.load %arg7[%c0_36, %c3_37, %c0_38, %c0_39] : memref<1x8x8x128xf32, #tpu.memory_space<vmem>>, vector<1x1x8x128xf32>
    %54 = vector.shape_cast %53 : vector<1x1x8x128xf32> to vector<8x128xf32>
    %55 = vector.broadcast %52 : vector<1x128xf32> to vector<8x128xf32>
    %56 = arith.mulf %55, %54 : vector<8x128xf32>
    %57 = arith.addf %45, %56 : vector<8x128xf32>
    %58 = vector.extract_strided_slice %4 {offsets = [4, 0], sizes = [1, 128], strides = [1, 1]} : vector<8x128xf32> to vector<1x128xf32>
    %c0_40 = arith.constant 0 : index
    %c4 = arith.constant 4 : index
    %c0_41 = arith.constant 0 : index
    %c0_42 = arith.constant 0 : index
    %59 = vector.load %arg6[%c0_40, %c4, %c0_41, %c0_42] : memref<1x8x8x128xf32, #tpu.memory_space<vmem>>, vector<1x1x8x128xf32>
    %60 = vector.shape_cast %59 : vector<1x1x8x128xf32> to vector<8x128xf32>
    %61 = vector.broadcast %58 : vector<1x128xf32> to vector<8x128xf32>
    %62 = arith.mulf %61, %60 : vector<8x128xf32>
    %63 = arith.addf %51, %62 : vector<8x128xf32>
    %64 = vector.extract_strided_slice %7 {offsets = [4, 0], sizes = [1, 128], strides = [1, 1]} : vector<8x128xf32> to vector<1x128xf32>
    %c0_43 = arith.constant 0 : index
    %c4_44 = arith.constant 4 : index
    %c0_45 = arith.constant 0 : index
    %c0_46 = arith.constant 0 : index
    %65 = vector.load %arg7[%c0_43, %c4_44, %c0_45, %c0_46] : memref<1x8x8x128xf32, #tpu.memory_space<vmem>>, vector<1x1x8x128xf32>
    %66 = vector.shape_cast %65 : vector<1x1x8x128xf32> to vector<8x128xf32>
    %67 = vector.broadcast %64 : vector<1x128xf32> to vector<8x128xf32>
    %68 = arith.mulf %67, %66 : vector<8x128xf32>
    %69 = arith.addf %57, %68 : vector<8x128xf32>
    %70 = vector.extract_strided_slice %4 {offsets = [5, 0], sizes = [1, 128], strides = [1, 1]} : vector<8x128xf32> to vector<1x128xf32>
    %c0_47 = arith.constant 0 : index
    %c5 = arith.constant 5 : index
    %c0_48 = arith.constant 0 : index
    %c0_49 = arith.constant 0 : index
    %71 = vector.load %arg6[%c0_47, %c5, %c0_48, %c0_49] : memref<1x8x8x128xf32, #tpu.memory_space<vmem>>, vector<1x1x8x128xf32>
    %72 = vector.shape_cast %71 : vector<1x1x8x128xf32> to vector<8x128xf32>
    %73 = vector.broadcast %70 : vector<1x128xf32> to vector<8x128xf32>
    %74 = arith.mulf %73, %72 : vector<8x128xf32>
    %75 = arith.addf %63, %74 : vector<8x128xf32>
    %76 = vector.extract_strided_slice %7 {offsets = [5, 0], sizes = [1, 128], strides = [1, 1]} : vector<8x128xf32> to vector<1x128xf32>
    %c0_50 = arith.constant 0 : index
    %c5_51 = arith.constant 5 : index
    %c0_52 = arith.constant 0 : index
    %c0_53 = arith.constant 0 : index
    %77 = vector.load %arg7[%c0_50, %c5_51, %c0_52, %c0_53] : memref<1x8x8x128xf32, #tpu.memory_space<vmem>>, vector<1x1x8x128xf32>
    %78 = vector.shape_cast %77 : vector<1x1x8x128xf32> to vector<8x128xf32>
    %79 = vector.broadcast %76 : vector<1x128xf32> to vector<8x128xf32>
    %80 = arith.mulf %79, %78 : vector<8x128xf32>
    %81 = arith.addf %69, %80 : vector<8x128xf32>
    %82 = vector.extract_strided_slice %4 {offsets = [6, 0], sizes = [1, 128], strides = [1, 1]} : vector<8x128xf32> to vector<1x128xf32>
    %c0_54 = arith.constant 0 : index
    %c6 = arith.constant 6 : index
    %c0_55 = arith.constant 0 : index
    %c0_56 = arith.constant 0 : index
    %83 = vector.load %arg6[%c0_54, %c6, %c0_55, %c0_56] : memref<1x8x8x128xf32, #tpu.memory_space<vmem>>, vector<1x1x8x128xf32>
    %84 = vector.shape_cast %83 : vector<1x1x8x128xf32> to vector<8x128xf32>
    %85 = vector.broadcast %82 : vector<1x128xf32> to vector<8x128xf32>
    %86 = arith.mulf %85, %84 : vector<8x128xf32>
    %87 = arith.addf %75, %86 : vector<8x128xf32>
    %88 = vector.extract_strided_slice %7 {offsets = [6, 0], sizes = [1, 128], strides = [1, 1]} : vector<8x128xf32> to vector<1x128xf32>
    %c0_57 = arith.constant 0 : index
    %c6_58 = arith.constant 6 : index
    %c0_59 = arith.constant 0 : index
    %c0_60 = arith.constant 0 : index
    %89 = vector.load %arg7[%c0_57, %c6_58, %c0_59, %c0_60] : memref<1x8x8x128xf32, #tpu.memory_space<vmem>>, vector<1x1x8x128xf32>
    %90 = vector.shape_cast %89 : vector<1x1x8x128xf32> to vector<8x128xf32>
    %91 = vector.broadcast %88 : vector<1x128xf32> to vector<8x128xf32>
    %92 = arith.mulf %91, %90 : vector<8x128xf32>
    %93 = arith.addf %81, %92 : vector<8x128xf32>
    %94 = vector.extract_strided_slice %4 {offsets = [7, 0], sizes = [1, 128], strides = [1, 1]} : vector<8x128xf32> to vector<1x128xf32>
    %c0_61 = arith.constant 0 : index
    %c7 = arith.constant 7 : index
    %c0_62 = arith.constant 0 : index
    %c0_63 = arith.constant 0 : index
    %95 = vector.load %arg6[%c0_61, %c7, %c0_62, %c0_63] : memref<1x8x8x128xf32, #tpu.memory_space<vmem>>, vector<1x1x8x128xf32>
    %96 = vector.shape_cast %95 : vector<1x1x8x128xf32> to vector<8x128xf32>
    %97 = vector.broadcast %94 : vector<1x128xf32> to vector<8x128xf32>
    %98 = arith.mulf %97, %96 : vector<8x128xf32>
    %99 = arith.addf %87, %98 : vector<8x128xf32>
    %100 = vector.extract_strided_slice %7 {offsets = [7, 0], sizes = [1, 128], strides = [1, 1]} : vector<8x128xf32> to vector<1x128xf32>
    %c0_64 = arith.constant 0 : index
    %c7_65 = arith.constant 7 : index
    %c0_66 = arith.constant 0 : index
    %c0_67 = arith.constant 0 : index
    %101 = vector.load %arg7[%c0_64, %c7_65, %c0_66, %c0_67] : memref<1x8x8x128xf32, #tpu.memory_space<vmem>>, vector<1x1x8x128xf32>
    %102 = vector.shape_cast %101 : vector<1x1x8x128xf32> to vector<8x128xf32>
    %103 = vector.broadcast %100 : vector<1x128xf32> to vector<8x128xf32>
    %104 = arith.mulf %103, %102 : vector<8x128xf32>
    %105 = arith.addf %93, %104 : vector<8x128xf32>
    %c0_68 = arith.constant 0 : index
    %c0_69 = arith.constant 0 : index
    %c0_70 = arith.constant 0 : index
    %106 = vector.load %arg8[%c0_68, %c0_69, %c0_70] : memref<1x128x64xf32, #tpu.memory_space<vmem>>, vector<1x128x64xf32>
    %107 = vector.shape_cast %106 : vector<1x128x64xf32> to vector<128x64xf32>
    %cst_71 = arith.constant dense<0.000000e+00> : vector<8x64xf32>
    %108 = tpu.matmul %99, %107, %cst_71 {dimension_numbers = #tpu.dot_dimension_numbers<[1], [0], [0], [1], [0, 0, 1, 1], [], []>} : vector<8x128xf32>, vector<128x64xf32>, vector<8x64xf32> -> vector<8x64xf32>
    %c0_72 = arith.constant 0 : index
    %c0_73 = arith.constant 0 : index
    %c0_74 = arith.constant 0 : index
    %109 = vector.load %arg9[%c0_72, %c0_73, %c0_74] : memref<1x128x64xf32, #tpu.memory_space<vmem>>, vector<1x128x64xf32>
    %110 = vector.shape_cast %109 : vector<1x128x64xf32> to vector<128x64xf32>
    %cst_75 = arith.constant dense<0.000000e+00> : vector<8x64xf32>
    %111 = tpu.matmul %105, %110, %cst_75 {dimension_numbers = #tpu.dot_dimension_numbers<[1], [0], [0], [1], [0, 0, 1, 1], [], []>} : vector<8x128xf32>, vector<128x64xf32>, vector<8x64xf32> -> vector<8x64xf32>
    %112 = arith.addf %108, %111 : vector<8x64xf32>
    %c0_76 = arith.constant 0 : index
    %c0_77 = arith.constant 0 : index
    %c0_78 = arith.constant 0 : index
    %113 = vector.load %arg10[%c0_76, %c0_77, %c0_78] : memref<1x64x64xf32, #tpu.memory_space<vmem>>, vector<1x64x64xf32>
    %114 = vector.shape_cast %113 : vector<1x64x64xf32> to vector<64x64xf32>
    %cst_79 = arith.constant dense<0.000000e+00> : vector<8x64xf32>
    %115 = tpu.matmul %1, %114, %cst_79 {dimension_numbers = #tpu.dot_dimension_numbers<[1], [0], [0], [1], [0, 0, 1, 1], [], []>} : vector<8x64xf32>, vector<64x64xf32>, vector<8x64xf32> -> vector<8x64xf32>
    %116 = arith.addf %112, %115 : vector<8x64xf32>
    %117 = arith.index_cast %arg0 : i32 to index
    %118 = arith.index_cast %arg1 : i32 to index
    %119 = memref.load %arg2[%117, %118] : memref<2x10xf32, #tpu.memory_space<smem>>
    %c0_i32 = arith.constant 0 : i32
    %120 = arith.cmpi eq, %arg1, %c0_i32 : i32
    %121 = arith.extui %120 : i1 to i32
    %c0_i32_80 = arith.constant 0 : i32
    %122 = arith.cmpi ne, %121, %c0_i32_80 : i32
    scf.if %122 {
      %cst_87 = arith.constant 0.000000e+00 : f32
      %131 = vector.broadcast %cst_87 : f32 to vector<8x64xf32>
      %c0_88 = arith.constant 0 : index
      %c0_89 = arith.constant 0 : index
      %c0_90 = arith.constant 0 : index
      %132 = vector.load %arg11[%c0_88, %c0_89, %c0_90] : memref<1x8x64xf32, #tpu.memory_space<vmem>>, vector<1x8x64xf32>
      %133 = vector.shape_cast %132 : vector<1x8x64xf32> to vector<8x64xf32>
      %134 = vector.shape_cast %131 : vector<8x64xf32> to vector<1x8x64xf32>
      tpu.vector_store %arg11[%c0_88, %c0_89, %c0_90], %134 {strides = array<i32>} : memref<1x8x64xf32, #tpu.memory_space<vmem>>, vector<1x8x64xf32>,
    } else {
    }
    %c0_81 = arith.constant 0 : index
    %c0_82 = arith.constant 0 : index
    %c0_83 = arith.constant 0 : index
    %123 = vector.load %arg11[%c0_81, %c0_82, %c0_83] : memref<1x8x64xf32, #tpu.memory_space<vmem>>, vector<1x8x64xf32>
    %124 = vector.shape_cast %123 : vector<1x8x64xf32> to vector<8x64xf32>
    %125 = vector.broadcast %119 : f32 to vector<8x64xf32>
    %126 = arith.mulf %125, %116 : vector<8x64xf32>
    %127 = arith.addf %124, %126 : vector<8x64xf32>
    %c0_84 = arith.constant 0 : index
    %c0_85 = arith.constant 0 : index
    %c0_86 = arith.constant 0 : index
    %128 = vector.load %arg11[%c0_84, %c0_85, %c0_86] : memref<1x8x64xf32, #tpu.memory_space<vmem>>, vector<1x8x64xf32>
    %129 = vector.shape_cast %128 : vector<1x8x64xf32> to vector<8x64xf32>
    %130 = vector.shape_cast %127 : vector<8x64xf32> to vector<1x8x64xf32>
    tpu.vector_store %arg11[%c0_84, %c0_85, %c0_86], %130 {strides = array<i32>} : memref<1x8x64xf32, #tpu.memory_space<vmem>>, vector<1x8x64xf32>,
    return
  }
  func.func @transform_0(%arg0: i32, %arg1: i32) -> (i32, i32) {
    %c0_i32 = arith.constant 0 : i32
    %c0_i32_0 = arith.constant 0 : i32
    %c0_i32_1 = arith.constant 0 : i32
    return %c0_i32, %c0_i32_0 : i32, i32
  }
  func.func @transform_1(%arg0: i32, %arg1: i32) -> (i32, i32, i32) {
    %c0_i32 = arith.constant 0 : i32
    %c0_i32_0 = arith.constant 0 : i32
    %c0_i32_1 = arith.constant 0 : i32
    return %arg0, %c0_i32, %c0_i32_0 : i32, i32, i32
  }
  func.func @transform_2(%arg0: i32, %arg1: i32) -> (i32, i32, i32) {
    %c0_i32 = arith.constant 0 : i32
    %c0_i32_0 = arith.constant 0 : i32
    %c0_i32_1 = arith.constant 0 : i32
    return %arg1, %c0_i32, %c0_i32_0 : i32, i32, i32
  }
  func.func @transform_3(%arg0: i32, %arg1: i32) -> (i32, i32, i32) {
    %c0_i32 = arith.constant 0 : i32
    %c0_i32_0 = arith.constant 0 : i32
    %c0_i32_1 = arith.constant 0 : i32
    return %arg1, %c0_i32, %c0_i32_0 : i32, i32, i32
  }
  func.func @transform_4(%arg0: i32, %arg1: i32) -> (i32, i32, i32, i32) {
    %c0_i32 = arith.constant 0 : i32
    %c0_i32_0 = arith.constant 0 : i32
    %c0_i32_1 = arith.constant 0 : i32
    %c0_i32_2 = arith.constant 0 : i32
    return %arg1, %c0_i32, %c0_i32_0, %c0_i32_1 : i32, i32, i32, i32
  }
  func.func @transform_5(%arg0: i32, %arg1: i32) -> (i32, i32, i32, i32) {
    %c0_i32 = arith.constant 0 : i32
    %c0_i32_0 = arith.constant 0 : i32
    %c0_i32_1 = arith.constant 0 : i32
    %c0_i32_2 = arith.constant 0 : i32
    return %arg1, %c0_i32, %c0_i32_0, %c0_i32_1 : i32, i32, i32, i32
  }
  func.func @transform_6(%arg0: i32, %arg1: i32) -> (i32, i32, i32) {
    %c0_i32 = arith.constant 0 : i32
    %c0_i32_0 = arith.constant 0 : i32
    %c0_i32_1 = arith.constant 0 : i32
    return %arg1, %c0_i32, %c0_i32_0 : i32, i32, i32
  }
  func.func @transform_7(%arg0: i32, %arg1: i32) -> (i32, i32, i32) {
    %c0_i32 = arith.constant 0 : i32
    %c0_i32_0 = arith.constant 0 : i32
    %c0_i32_1 = arith.constant 0 : i32
    return %arg1, %c0_i32, %c0_i32_0 : i32, i32, i32
  }
  func.func @transform_8(%arg0: i32, %arg1: i32) -> (i32, i32, i32) {
    %c0_i32 = arith.constant 0 : i32
    %c0_i32_0 = arith.constant 0 : i32
    %c0_i32_1 = arith.constant 0 : i32
    return %arg1, %c0_i32, %c0_i32_0 : i32, i32, i32
  }
  func.func @transform_9(%arg0: i32, %arg1: i32) -> (i32, i32, i32) {
    %c0_i32 = arith.constant 0 : i32
    %c0_i32_0 = arith.constant 0 : i32
    %c0_i32_1 = arith.constant 0 : i32
    return %arg0, %c0_i32, %c0_i32_0 : i32, i32, i32
  }
}

</mosaic_0001>

<bundles_post_ra>
// kernel: _lambda_.1
= control target key start
LH: loop header
LB: loop body
LE: loop exit
PB: predicated region body
PF: predicated region fallthrough
CT: control target
= control target key end

     0   :  { %s3130_s0 = inlined_call_operand.vmem [shape: f32[2,10], index: 0, kind: input, shape index: {}]   ;;  %s3131_s1 = inlined_call_operand.hbm [shape: f32[2,8,64], index: 1, kind: input, shape index: {}]   ;;  %s3132_s2 = inlined_call_operand.hbm [shape: f32[10,64,128], index: 2, kind: input, shape index: {}]   ;;  %s3133_s3 = inlined_call_operand.hbm [shape: f32[10,64,128], index: 3, kind: input, shape index: {}]   ;;  %s3134_s4 = inlined_call_operand.hbm [shape: f32[10,8,8,128], index: 4, kind: input, shape index: {}]   ;;  %s3135_s5 = inlined_call_operand.hbm [shape: f32[10,8,8,128], index: 5, kind: input, shape index: {}]   ;;  %s3136_s6 = inlined_call_operand.hbm [shape: f32[10,128,64], index: 6, kind: input, shape index: {}]   ;;  %s3137_s7 = inlined_call_operand.hbm [shape: f32[10,128,64], index: 7, kind: input, shape index: {}]   ;;  %s3138_s8 = inlined_call_operand.hbm [shape: f32[10,64,64], index: 8, kind: input, shape index: {}]   ;;  %s3139_s9 = inlined_call_operand.hbm [shape: f32[2,8,64], index: 9, kind: output, shape index: {}]  }
   0x1   :  { %3176 = sst [smem:[#allocation38_spill]] %s3130_s0 }
   0x2   :  { %3177 = sst [smem:[#allocation39_spill]] %s3131_s1 }
   0x3   :  { %3178 = sst [smem:[#allocation40_spill]] %s3132_s2 }
   0x4   :  { %3179 = sst [smem:[#allocation41_spill]] %s3133_s3 }
   0x5   :  { %3180 = sst [smem:[#allocation42_spill]] %s3134_s4 }
   0x6   :  { %3181 = sst [smem:[#allocation43_spill]] %s3135_s5 }
   0x7   :  { %3182 = sst [smem:[#allocation44_spill]] %s3136_s6 }
   0x8   :  { %3183 = sst [smem:[#allocation45_spill]] %s3138_s8 }
   0x9   :  { %3184 = sst [smem:[#allocation46_spill]] %s3139_s9 }
   0xa   :  { %14 = vsyncpa [#allocation5], 0 }
   0xb   :  { %15 = vsyncpa [#allocation3], 0 }
   0xc   :  { %17 = vsyncpa [#allocation3 + $0x1], 0 }
   0xd   :  { %18 = vsyncpa [#allocation8], 0 }
   0xe   :  { %20 = vsyncpa [#allocation8 + $0x1], 0 }
   0xf   :  { %21 = vsyncpa [#allocation11], 0 }
  0x10   :  { %23 = vsyncpa [#allocation11 + $0x1], 0 }
  0x11   :  { %24 = vsyncpa [#allocation14], 0 }
  0x12   :  { %26 = vsyncpa [#allocation14 + $0x1], 0 }
  0x13   :  { %27 = vsyncpa [#allocation17], 0 }
  0x14   :  { %29 = vsyncpa [#allocation17 + $0x1], 0 }
  0x15   :  { %30 = vsyncpa [#allocation4], 0 }
  0x16   :  { %32 = vsyncpa [#allocation4 + $0x1], 0  ;;  %s2423_s30 = smov 0   ;;  %s2425_s10 = smov 0  }
  0x17   :  { %s2427_s11 = smov 0   ;;  %s2429_s12 = smov 0  }
  0x18   :  { %s2431_s13 = smov 0   ;;  %s2433_s14 = smov 0  }
  0x19   :  { %s2435_s15 = smov 0   ;;  %s2437_s16 = smov 0  }
  0x1a   :  { %s2439_s17 = smov 0   ;;  %s2441_s18 = smov 0  }
  0x1b   :  { %s2443_s19 = smov 0  }
  0x1c LB: > { %3185 = sst [smem:[#allocation26_spill]] %s2319_s10  ;;  %p3145_p0 = scmp.eq.s32.totalorder %s2355_s19, 0  ;;  %s2355_s19 = sphi %s2443_s19, %s38_s19   ;;  %s2351_s18 = sphi %s2441_s18, %s3252_s18   ;;  %s2347_s17 = sphi %s2439_s17, %s3251_s17   ;;  %s2343_s16 = sphi %s2437_s16, %s3250_s16   ;;  %s2339_s15 = sphi %s2435_s15, %s3249_s15   ;;  %s2335_s14 = sphi %s2433_s14, %s3255_s14   ;;  %s2331_s13 = sphi %s2431_s13, %s3254_s13   ;;  %s2327_s12 = sphi %s2429_s12, %s3253_s12   ;;  %s2323_s11 = sphi %s2427_s11, %s3247_s11   ;;  %s2319_s10 = sphi %s2425_s10, %s3246_s10   ;;  %s2315_s30 = sphi %s2423_s30, %s3245_s30  }
  0x1d   : > { %3186 = sst [smem:[#allocation27_spill]] %s2323_s11  ;;  %p111_p1 = scmp.ne.s32.totalorder %s2323_s11, %s2319_s10 }
  0x1e   : > { %3187 = sst [smem:[#allocation28_spill]] %s2339_s15  ;;  %p3144_p2 = scmp.lt.s32.totalorder %s2355_s19, 20 }
  0x1f   : > { %3188 = sst [smem:[#allocation29_spill]] %s2343_s16  ;;  %s2484_s21 = sand.u32 1, %s2355_s19  }
  0x20   : > { %3189 = sst [smem:[#allocation30_spill]] %s2347_s17  ;;  %p113_p3 = por %p111_p1, %p3145_p0 }
  0x21   : > { %3190 = sst [smem:[#allocation31_spill]] %s2351_s18  ;;  %s2489_s22 = sand.u32 1, %s2323_s11  }
  0x22   : > { %s2492_s23 = sshll.u32 %s2347_s17, 10  ;;  %s2495_s24 = sshll.u32 %s2489_s22, 6 }
  0x23   : > { %s3191_s2 = sld [smem:[#allocation40_spill]]  ;;  %p2505_p4 = pnand %p3144_p2, %p113_p3 }
  0x24   : > { %s356_s29 = scalar_lea.vmem [#allocation7], %s2495_s24 }
  0x25   : > { %s3192_s28 = scalar_select %p2505_p4, 1, 0 }
  0x26   : > { %s363_s20 = sshll.u32 %s356_s29, 4  ;;  %p2517_p6 = pneg %p2505_p4  ;;  %s2510_s20 = int_to_ptr.vmem [resolvable:$true] %s363_s20 }
  0x28   : > { %s3193_s25 = scalar_select %p2517_p6, 1, 0 }
  0x29   : > { %s2501_s27 = scalar_lea.hbm %s3191_s2, %s2492_s23  ;;  %s1963_s8 = scalar_lea.hbm %s3191_s2, 10240 }
  0x2a   : > { %s1958_s16 = scalar_lea.hbm %s2501_s27, 1024  ;;  %p1964_p9 = scmp.lt.u32.totalorder %s2501_s27, %s3191_s2 }
  0x2b   : > { %p1959_p5 = scmp.ne.s32.totalorder %s2501_s27, %s1958_s16  ;;  %p1965_p10 = scmp.lt.u32.totalorder %s1963_s8, %s1958_s16 }
  0x2c   : > { %p1967_p12 = scmp.lt.u32.totalorder %s1958_s16, %s2501_s27 }
  0x2d   : > { %p1961_p7 = pnand %p2517_p6, %p1959_p5  ;;  %p1966_p11 = por %p1965_p10, %p1964_p9 }
  0x2f   : > { %p1962_p8 = pneg %p1961_p7  ;;  %p1968_p13 = por %p1967_p12, %p1966_p11 }
  0x31   : > { %p1969_p1 = pnand %p1968_p13, %p1962_p8 }
  0x33   : > { %1972 = shalt.err (!%p1969_p1)
}
  0x34   : > { %s1973_s9 = scalar_lea.vmem %s2510_s20, 1024  ;;  %s2357_s15 = smov [#allocation7]  }
  0x35   : > { %p1974_p3 = scmp.ne.s32.totalorder %s2510_s20, %s1973_s9  ;;  %s1978_s26 = sshll.u32 %s2357_s15, 4  ;;  %s1979_s26 = int_to_ptr.vmem [resolvable:$false] %s1978_s26 }
  0x36   : > { %s1980_s5 = scalar_lea.vmem %s1979_s26, 2048  ;;  %p1981_p2 = scmp.lt.s32.totalorder %s2510_s20, %s1979_s26 }
  0x37   : > { %p1976_p5 = pnand %p1974_p3, %p2517_p6  ;;  %p1982_p0 = scmp.lt.s32.totalorder %s1980_s5, %s1973_s9 }
  0x39   : > { %p1977_p7 = pneg %p1976_p5  ;;  %p1983_p9 = por %p1982_p0, %p1981_p2 }
  0x3b   : > { %p1984_p10 = pnand %p1983_p9, %p1977_p7 }
  0x3d   : > { %1987 = shalt.err (!%p1984_p10)
}
  0x3e   : > { %s3157_s8 = smov 128   ;;  %s3159_s16 = smov 8  }
  0x3f   : > { %s3194_s29 = scalar_lea.sflag [#allocation8], %s2484_s21  ;;  %s3195_s4 = sld [smem:[#allocation42_spill]] }
  0x40   : > { %1836 = dma.hbm_to_vmem [thread:$0]  (!%p2505_p4), %s2501_s27, 1024, %s2510_s20, %s3194_s29, %s3157_s8, %s3157_s8, %s3159_s16  }
  0x41   : > { %s398_s5 = scalar_lea.vmem [#allocation10], %s2495_s24  ;;  %s1479_s3 = sshll.u32 %s2489_s22, 7 }
  0x42   : > { %s405_s2 = sshll.u32 %s398_s5, 4  ;;  %s3150_s1 = scalar_lea.sflag [#allocation11], %s2484_s21  ;;  %s2552_s2 = int_to_ptr.vmem [resolvable:$true] %s405_s2 }
  0x45   : > { %s2549_s26 = scalar_lea.hbm %s3195_s4, %s2492_s23  ;;  %s1993_s29 = scalar_lea.hbm %s3195_s4, 10240 }
  0x46   : > { %s1988_s11 = scalar_lea.hbm %s2549_s26, 1024  ;;  %p1994_p11 = scmp.lt.u32.totalorder %s2549_s26, %s3195_s4 }
  0x47   : > { %p1989_p0 = scmp.ne.s32.totalorder %s2549_s26, %s1988_s11  ;;  %p1995_p12 = scmp.lt.u32.totalorder %s1993_s29, %s1988_s11 }
  0x48   : > { %p1997_p1 = scmp.lt.u32.totalorder %s1988_s11, %s2549_s26 }
  0x49   : > { %p1991_p2 = pnand %p1989_p0, %p2517_p6  ;;  %p1996_p13 = por %p1995_p12, %p1994_p11 }
  0x4b   : > { %p1992_p8 = pneg %p1991_p2  ;;  %p1998_p3 = por %p1997_p1, %p1996_p13 }
  0x4d   : > { %p1999_p5 = pnand %p1998_p3, %p1992_p8 }
  0x4f   : > { %2002 = shalt.err (!%p1999_p5)
}
  0x50   : > { %s2003_s5 = scalar_lea.vmem %s2552_s2, 1024  ;;  %s2360_s20 = smov [#allocation10]  }
  0x51   : > { %p2004_p7 = scmp.ne.s32.totalorder %s2552_s2, %s2003_s5  ;;  %s2008_s27 = sshll.u32 %s2360_s20, 4  ;;  %s2009_s27 = int_to_ptr.vmem [resolvable:$false] %s2008_s27 }
  0x52   : > { %s2010_s9 = scalar_lea.vmem %s2009_s27, 2048  ;;  %p2011_p0 = scmp.lt.s32.totalorder %s2552_s2, %s2009_s27 }
  0x53   : > { %p2006_p9 = pnand %p2004_p7, %p2517_p6  ;;  %p2012_p2 = scmp.lt.s32.totalorder %s2010_s9, %s2003_s5 }
  0x55   : > { %p2007_p10 = pneg %p2006_p9  ;;  %p2013_p11 = por %p2012_p2, %p2011_p0 }
  0x57   : > { %p2014_p12 = pnand %p2013_p11, %p2007_p10 }
  0x59   : > { %2017 = shalt.err (!%p2014_p12)
}
  0x5a   : > { %1842 = dma.hbm_to_vmem [thread:$0]  (!%p2505_p4), %s2549_s26, 1024, %s2552_s2, %s3150_s1, %s3157_s8, %s3157_s8, %s3159_s16  }
  0x5b   : > { %s1526_s11 = sshll.u32 %s2347_s17, 11  ;;  %s3196_s6 = sld [smem:[#allocation44_spill]] }
  0x5c   : > { %s440_s20 = scalar_lea.vmem [#allocation13], %s1479_s3  ;;  %s3156_s9 = scalar_lea.sflag [#allocation14], %s2484_s21 }
  0x5d   : > { %s447_s27 = sshll.u32 %s440_s20, 4  ;;  %s2592_s27 = int_to_ptr.vmem [resolvable:$true] %s447_s27 }
  0x61   : > { %s2588_s5 = scalar_lea.hbm %s3196_s6, %s1526_s11  ;;  %s2023_s29 = scalar_lea.hbm %s3196_s6, 20480 }
  0x62   : > { %s2018_s4 = scalar_lea.hbm %s2588_s5, 2048  ;;  %p2024_p3 = scmp.lt.u32.totalorder %s2588_s5, %s3196_s6 }
  0x63   : > { %p2019_p8 = scmp.ne.s32.totalorder %s2588_s5, %s2018_s4  ;;  %p2025_p5 = scmp.lt.u32.totalorder %s2023_s29, %s2018_s4 }
  0x64   : > { %p2027_p9 = scmp.lt.u32.totalorder %s2018_s4, %s2588_s5 }
  0x65   : > { %p2021_p13 = pnand %p2019_p8, %p2517_p6  ;;  %p2026_p7 = por %p2025_p5, %p2024_p3 }
  0x67   : > { %p2022_p1 = pneg %p2021_p13  ;;  %p2028_p10 = por %p2027_p9, %p2026_p7 }
  0x69   : > { %p2029_p0 = pnand %p2028_p10, %p2022_p1 }
  0x6b   : > { %2032 = shalt.err (!%p2029_p0)
}
  0x6c   : > { %s2033_s20 = scalar_lea.vmem %s2592_s27, 2048  ;;  %s2361_s2 = smov [#allocation13]  }
  0x6d   : > { %p2034_p2 = scmp.ne.s32.totalorder %s2592_s27, %s2033_s20  ;;  %s2038_s26 = sshll.u32 %s2361_s2, 4  ;;  %s2039_s26 = int_to_ptr.vmem [resolvable:$false] %s2038_s26 }
  0x6e   : > { %s2040_s1 = scalar_lea.vmem %s2039_s26, 4096  ;;  %p2041_p8 = scmp.lt.s32.totalorder %s2592_s27, %s2039_s26 }
  0x6f   : > { %p2036_p11 = pnand %p2034_p2, %p2517_p6  ;;  %p2042_p13 = scmp.lt.s32.totalorder %s2040_s1, %s2033_s20 }
  0x71   : > { %p2037_p12 = pneg %p2036_p11  ;;  %p2043_p3 = por %p2042_p13, %p2041_p8 }
  0x73   : > { %p2044_p5 = pnand %p2043_p3, %p2037_p12 }
  0x75   : > { %2047 = shalt.err (!%p2044_p5)
}
  0x76   : > { %1848 = dma.hbm_to_vmem [thread:$0]  (!%p2505_p4), %s2588_s5, 2048, %s2592_s27, %s3156_s9, %s3157_s8, %s3157_s8, %s3159_s16  }
  0x77   : > { %s2626_s15 = scalar_lea.hbm %s3137_s7, %s1526_s11  ;;  %s461_s20 = scalar_lea.vmem [#allocation15], %s1479_s3 }
  0x78   : > { %s468_s2 = sshll.u32 %s461_s20, 4  ;;  %s2633_s26 = sadd.s32 4294967295, %s2355_s19   ;;  %s2630_s2 = int_to_ptr.vmem [resolvable:$true] %s468_s2 }
  0x79   : > { %p3170_p1 = scmp.eq.s32.totalorder %s2633_s26, 0  ;;  %p117_p7 = scmp.ne.s32.totalorder %s2319_s10, %s2315_s30 }
  0x7a   : > { %p1462_p10 = scmp.ge.s32.totalorder %s2355_s19, 1  ;;  %p310_p2 = scmp.lt.s32.totalorder %s2355_s19, 21 }
  0x7b   : > { %p2642_p0 = por %p117_p7, %p3170_p1  ;;  %s3199_s0 = sld [smem:[#allocation38_spill]] }
  0x7c   : > { %p2650_p11 = pnand %p1462_p10, %p310_p2 }
  0x7d   : > { %s3197_s5 = scalar_select %p2642_p0, 1, 0 }
  0x7e   : > { %s3200_s1 = scalar_select %p2650_p11, 1, 0 }
  0x7f   : > { %3198 = sst [smem:[#allocation32_spill]] %s3197_s5  ;;  %p1826_p12 = pneg %p2650_p11 }
  0x81   : > { %s323_s27 = sshll.u32 %s3199_s0, 4  ;;  %p1827_p8 = pnand %p1826_p12, %p3170_p1  ;;  %s324_s27 = int_to_ptr.vmem [resolvable:$true] %s323_s27 }
  0x82   : > { %s2048_s30 = scalar_lea.vmem %s324_s27, 32  ;;  %p2056_p9 = scmp.lt.s32.totalorder %s324_s27, %s324_s27 }
  0x83   : > { %p2049_p13 = scmp.ne.s32.totalorder %s324_s27, %s2048_s30  ;;  %p2050_p3 = pneg %p1827_p8 }
  0x84   : > { %p2057_p0 = scmp.lt.s32.totalorder %s2048_s30, %s2048_s30 }
  0x85   : > { %p2051_p5 = pnand %p2050_p3, %p2049_p13 }
  0x86   : > { %p2058_p4 = por %p2057_p0, %p2056_p9 }
  0x87   : > { %p2052_p7 = pneg %p2051_p5 }
  0x89   : > { %p2059_p6 = pnand %p2058_p4, %p2052_p7 }
  0x8b   : > { %2062 = shalt.err (!%p2059_p6)
}
  0x8c   : > { %s2362_s4 = smov [#allocation2]   ;;  %s3201_s29 = sld [smem:[#allocation27_spill]] }
  0x8d   : > { %1829 = dma.vmem_to_smem (!%p1827_p8), %s324_s27, 32, %s2362_s4, [#allocation5]  }
  0x8e   : > { %s1461_s20 = sadd.s32 4294967294, %s2355_s19   ;;  %s47_s3 = sadd.s32 1, %s2347_s17 }
  0x8f   : > { %p48_p4 = scmp.ge.s32.totalorder %s47_s3, 10  ;;  %s50_s11 = sadd.s32 1, %s2351_s18 }
  0x90   : > { %s78_s30 = sadd.s32 1, %s2335_s14  ;;  %p85_p6 = scmp.ne.s32.totalorder %s2335_s14, %s2331_s13 }
  0x91   : > { %s3257_s3 = smov (%p48_p4, %s47_s3), 0  ;;  %s3259_s11 = smov (!%p48_p4, %s50_s11), %s2351_s18 }
  0x92   : > { %3202 = sst [smem:[#allocation33_spill]] %s3257_s3  ;;  %p3203_p9 = scmp.eq.s32.totalorder %s2355_s19, 0 }
  0x93   : > { %p91_p0 = scmp.ne.s32.totalorder %s2331_s13, %s2327_s12  ;;  %p52_p2 = scmp.ge.s32.totalorder %s3259_s11, 2 }
  0x94   : > { %p2669_p10 = por %p3203_p9, %p85_p6  ;;  %s101_s4 = ssub.s32 %s2347_s17, %s3257_s3 }
  0x95   : > { %p2682_p12 = por %p3170_p1, %p91_p0  ;;  %p102_p8 = scmp.eq.s32.totalorder %s101_s4, 0 }
  0x96   : > { %s3261_s11 = smov (%p52_p2, %s3259_s11), 0  ;;  %s3208_s8 = sadd.s32 1, %s3201_s29 }
  0x97   : > { %s3205_s9 = scalar_select %p2682_p12, 1, 0 }
  0x98   : > { %3207 = sst [smem:[#allocation35_spill]] %s3261_s11  ;;  %s3263_s29 = smov (!%p102_p8, %s3201_s29), %s3208_s8 }
  0x99   : > { %3206 = sst [smem:[#allocation34_spill]] %s3205_s9  ;;  %s75_s16 = ssub.s32 %s2351_s18, %s3261_s11 }
  0x9a   : > { %3209 = sst [smem:[#allocation36_spill]] %s3263_s29  ;;  %p3210_p13 = scmp.eq.s32.totalorder %s2633_s26, 19 }
  0x9b   : > { %p76_p5 = scmp.eq.s32.totalorder %s75_s16, 0  ;;  %p303_p7 = scmp.eq.s32.totalorder %s1461_s20, 19 }
  0x9c   : > { %p2697_p3 = por %p3210_p13, %p85_p6  ;;  %s334_s6 = sand.u32 1, %s2335_s14  }
  0x9d   : > { %s1466_s3 = sshll.u32 %s2351_s18, 7  ;;  %p2709_p4 = por %p303_p7, %p91_p0 }
  0x9e   : > { %s3211_s0 = scalar_select %p2697_p3, 1, 0 }
  0x9f   : > { %s2704_s17 = scalar_select %p76_p5, %s2335_s14, %s78_s30  }
  0xa0   : > { %s3213_s4 = scalar_select %p2709_p4, 1, 0 }
  0xa1   : > { %3212 = sst [smem:[#allocation37_spill]] %s2704_s17  ;;  %s1465_s5 = sshll.u32 %s334_s6, 3 }
  0xa2   : > { %s3214_s11 = sld [smem:[#allocation39_spill]]  ;;  %p3216_p6 = scmp.lt.s32.totalorder %s2355_s19, 20 }
  0xa3   : > { %s338_s20 = scalar_lea.vmem [#allocation6], %s1465_s5  ;;  %s335_s18 = scalar_lea.sflag [#allocation3], %s334_s6 }
  0xa4   : > { %p2722_p9 = pnand %p3216_p6, %p2669_p10  ;;  %s345_s30 = sshll.u32 %s338_s20, 4  ;;  %s2726_s30 = int_to_ptr.vmem [resolvable:$true] %s345_s30 }
  0xa6   : > { %p2065_p2 = pneg %p2722_p9 }
  0xa8   : > { %s3215_s9 = smov %s3214_s11  ;;  %s2716_s10 = scalar_lea.hbm %s3214_s11, %s1466_s3 }
  0xa9   : > { %s2063_s29 = scalar_lea.hbm %s2716_s10, 128  ;;  %s2068_s27 = scalar_lea.hbm %s3215_s9, 256 }
  0xaa   : > { %p2064_p0 = scmp.ne.s32.totalorder %s2716_s10, %s2063_s29  ;;  %p2069_p10 = scmp.lt.u32.totalorder %s2716_s10, %s3215_s9 }
  0xab   : > { %p2070_p5 = scmp.lt.u32.totalorder %s2068_s27, %s2063_s29  ;;  %p2072_p6 = scmp.lt.u32.totalorder %s2063_s29, %s2716_s10 }
  0xac   : > { %p2066_p8 = pnand %p2065_p2, %p2064_p0 }
  0xad   : > { %p2071_p7 = por %p2070_p5, %p2069_p10 }
  0xae   : > { %p2067_p13 = pneg %p2066_p8 }
  0xaf   : > { %p2073_p1 = por %p2072_p6, %p2071_p7 }
  0xb1   : > { %p2074_p4 = pnand %p2073_p1, %p2067_p13 }
  0xb3   : > { %2077 = shalt.err (!%p2074_p4)
}
  0xb4   : > { %s2078_s6 = scalar_lea.vmem %s2726_s30, 128  ;;  %s2363_s5 = smov [#allocation6]  }
  0xb5   : > { %p2079_p0 = scmp.ne.s32.totalorder %s2726_s30, %s2078_s6  ;;  %s2083_s20 = sshll.u32 %s2363_s5, 4  ;;  %s2084_s20 = int_to_ptr.vmem [resolvable:$false] %s2083_s20 }
  0xb6   : > { %s2085_s17 = scalar_lea.vmem %s2084_s20, 256  ;;  %p2086_p12 = scmp.lt.s32.totalorder %s2726_s30, %s2084_s20 }
  0xb7   : > { %p2081_p8 = pnand %p2079_p0, %p2065_p2  ;;  %p2087_p10 = scmp.lt.s32.totalorder %s2085_s17, %s2078_s6 }
  0xb9   : > { %p2082_p3 = pneg %p2081_p8  ;;  %p2088_p5 = por %p2087_p10, %p2086_p12 }
  0xbb   : > { %p2089_p7 = pnand %p2088_p5, %p2082_p3 }
  0xbd   : > { %2092 = shalt.err (!%p2089_p7)
}
  0xbe   : > { %1833 = dma.hbm_to_vmem [thread:$0]  (!%p2722_p9), %s2716_s10, 128, %s2726_s30, %s335_s18  }
  0xbf   : > { %s3218_s11 = sld [smem:[#allocation41_spill]]  ;;  %s377_s6 = scalar_lea.vmem [#allocation9], %s2495_s24 }
  0xc0   : > { %s384_s5 = sshll.u32 %s377_s6, 4  ;;  %p3220_p12 = scmp.ne.s32.totalorder %s3193_s25, 0  ;;  %s2760_s5 = int_to_ptr.vmem [resolvable:$true] %s384_s5 }
  0xc5   : > { %s3219_s27 = smov %s3218_s11  ;;  %s2757_s8 = scalar_lea.hbm %s3218_s11, %s2492_s23 }
  0xc6   : > { %s2093_s16 = scalar_lea.hbm %s2757_s8, 1024  ;;  %s2098_s18 = scalar_lea.hbm %s3219_s27, 10240 }
  0xc7   : > { %p2094_p1 = scmp.ne.s32.totalorder %s2757_s8, %s2093_s16  ;;  %p2099_p9 = scmp.lt.u32.totalorder %s2757_s8, %s3219_s27 }
  0xc8   : > { %p2100_p2 = scmp.lt.u32.totalorder %s2098_s18, %s2093_s16  ;;  %p2102_p6 = scmp.lt.u32.totalorder %s2093_s16, %s2757_s8 }
  0xc9   : > { %p2096_p3 = pnand %p2094_p1, %p3220_p12 }
  0xca   : > { %p2101_p13 = por %p2100_p2, %p2099_p9 }
  0xcb   : > { %p2097_p4 = pneg %p2096_p3 }
  0xcc   : > { %p2103_p0 = por %p2102_p6, %p2101_p13 }
  0xce   : > { %p2104_p8 = pnand %p2103_p0, %p2097_p4 }
  0xd0   : > { %2107 = shalt.err (!%p2104_p8)
}
  0xd1   : > { %s2108_s29 = scalar_lea.vmem %s2760_s5, 1024  ;;  %s2364_s3 = smov [#allocation9]  }
  0xd2   : > { %p2109_p10 = scmp.ne.s32.totalorder %s2760_s5, %s2108_s29  ;;  %s2113_s11 = sshll.u32 %s2364_s3, 4  ;;  %s2114_s11 = int_to_ptr.vmem [resolvable:$false] %s2113_s11 }
  0xd3   : > { %s2115_s6 = scalar_lea.vmem %s2114_s11, 2048  ;;  %p2116_p1 = scmp.lt.s32.totalorder %s2760_s5, %s2114_s11 }
  0xd4   : > { %p2111_p5 = pnand %p2109_p10, %p3220_p12  ;;  %p2117_p3 = scmp.lt.s32.totalorder %s2115_s6, %s2108_s29 }
  0xd6   : > { %p2112_p7 = pneg %p2111_p5  ;;  %p2118_p9 = por %p2117_p3, %p2116_p1 }
  0xd8   : > { %p2119_p2 = pnand %p2118_p9, %p2112_p7 }
  0xda   : > { %2122 = shalt.err (!%p2119_p2)
}
  0xdb   : > { %p3221_p4 = scmp.ne.s32.totalorder %s3192_s28, 0  ;;  %s3222_s16 = smov 8  }
  0xdc   : > { %s3223_s20 = smov 128   ;;  %s3224_s10 = scalar_lea.sflag [#allocation8], %s2484_s21 }
  0xdd   : > { %1839 = dma.hbm_to_vmem [thread:$0]  (!%p3221_p4), %s2757_s8, 1024, %s2760_s5, %s3224_s10, %s3223_s20, %s3223_s20, %s3222_s16  }
  0xde   : > { %s3225_s17 = sld [smem:[#allocation43_spill]]  ;;  %s419_s11 = scalar_lea.vmem [#allocation12], %s2495_s24 }
  0xdf   : > { %s426_s6 = sshll.u32 %s419_s11, 4  ;;  %s2795_s6 = int_to_ptr.vmem [resolvable:$true] %s426_s6 }
  0xe4   : > { %s3226_s3 = smov %s3225_s17  ;;  %s2792_s29 = scalar_lea.hbm %s3225_s17, %s2492_s23 }
  0xe5   : > { %s2123_s9 = scalar_lea.hbm %s2792_s29, 1024  ;;  %s2128_s5 = scalar_lea.hbm %s3226_s3, 10240 }
  0xe6   : > { %p2124_p13 = scmp.ne.s32.totalorder %s2792_s29, %s2123_s9  ;;  %p2129_p8 = scmp.lt.u32.totalorder %s2792_s29, %s3226_s3 }
  0xe7   : > { %p2130_p10 = scmp.lt.u32.totalorder %s2128_s5, %s2123_s9  ;;  %p2132_p7 = scmp.lt.u32.totalorder %s2123_s9, %s2792_s29 }
  0xe8   : > { %p2126_p6 = pnand %p2124_p13, %p3220_p12 }
  0xe9   : > { %p2131_p5 = por %p2130_p10, %p2129_p8 }
  0xea   : > { %p2127_p0 = pneg %p2126_p6 }
  0xeb   : > { %p2133_p1 = por %p2132_p7, %p2131_p5 }
  0xed   : > { %p2134_p3 = pnand %p2133_p1, %p2127_p0 }
  0xef   : > { %2137 = shalt.err (!%p2134_p3)
}
  0xf0   : > { %s2138_s30 = scalar_lea.vmem %s2795_s6, 1024  ;;  %s2365_s27 = smov [#allocation12]  }
  0xf1   : > { %p2139_p9 = scmp.ne.s32.totalorder %s2795_s6, %s2138_s30  ;;  %s2143_s17 = sshll.u32 %s2365_s27, 4  ;;  %s2144_s17 = int_to_ptr.vmem [resolvable:$false] %s2143_s17 }
  0xf2   : > { %s2145_s11 = scalar_lea.vmem %s2144_s17, 2048  ;;  %p2146_p6 = scmp.lt.s32.totalorder %s2795_s6, %s2144_s17 }
  0xf3   : > { %p2141_p2 = pnand %p2139_p9, %p3220_p12  ;;  %p2147_p11 = scmp.lt.s32.totalorder %s2145_s11, %s2138_s30 }
  0xf5   : > { %p2142_p13 = pneg %p2141_p2  ;;  %p2148_p8 = por %p2147_p11, %p2146_p6 }
  0xf7   : > { %p2149_p10 = pnand %p2148_p8, %p2142_p13 }
  0xf9   : > { %2152 = shalt.err (!%p2149_p10)
}
  0xfa   : > { %s3227_s9 = scalar_lea.sflag [#allocation11], %s2484_s21  ;;  %s2153_s8 = scalar_lea.hbm %s2626_s15, 2048 }
  0xfb   : > { %1845 = dma.hbm_to_vmem [thread:$0]  (!%p3221_p4), %s2792_s29, 1024, %s2795_s6, %s3227_s9, %s3223_s20, %s3223_s20, %s3222_s16  }
  0xfc   : > { %p2154_p0 = scmp.ne.s32.totalorder %s2626_s15, %s2153_s8  ;;  %s2158_s18 = scalar_lea.hbm %s3137_s7, 20480 }
  0xfd   : > { %p2159_p7 = scmp.lt.u32.totalorder %s2626_s15, %s3137_s7  ;;  %p2160_p1 = scmp.lt.u32.totalorder %s2158_s18, %s2153_s8 }
  0xfe   : > { %p2156_p11 = pnand %p2154_p0, %p3220_p12  ;;  %p2162_p9 = scmp.lt.u32.totalorder %s2153_s8, %s2626_s15 }
  0xff   : > { %p2161_p3 = por %p2160_p1, %p2159_p7 }
 0x100   : > { %p2157_p5 = pneg %p2156_p11 }
 0x101   : > { %p2163_p2 = por %p2162_p9, %p2161_p3 }
 0x103   : > { %p2164_p13 = pnand %p2163_p2, %p2157_p5 }
 0x105   : > { %2167 = shalt.err (!%p2164_p13)
}
 0x106   : > { %s2168_s29 = scalar_lea.vmem %s2630_s2, 2048  ;;  %s2366_s6 = smov [#allocation15]  }
 0x107   : > { %p2169_p6 = scmp.ne.s32.totalorder %s2630_s2, %s2168_s29  ;;  %s2173_s17 = sshll.u32 %s2366_s6, 4  ;;  %s2174_s17 = int_to_ptr.vmem [resolvable:$false] %s2173_s17 }
 0x108   : > { %s2175_s11 = scalar_lea.vmem %s2174_s17, 4096  ;;  %p2176_p0 = scmp.lt.s32.totalorder %s2630_s2, %s2174_s17 }
 0x109   : > { %p2171_p8 = pnand %p2169_p6, %p3220_p12  ;;  %p2177_p11 = scmp.lt.s32.totalorder %s2175_s11, %s2168_s29 }
 0x10b   : > { %p2172_p10 = pneg %p2171_p8  ;;  %p2178_p7 = por %p2177_p11, %p2176_p0 }
 0x10d   : > { %p2179_p1 = pnand %p2178_p7, %p2172_p10 }
 0x10f   : > { %2182 = shalt.err (!%p2179_p1)
}
 0x110   : > { %s3228_s9 = scalar_lea.sflag [#allocation14], %s2484_s21  ;;  %s3229_s10 = sld [smem:[#allocation45_spill]] }
 0x111   : > { %1851 = dma.hbm_to_vmem [thread:$0]  (!%p3221_p4), %s2626_s15, 2048, %s2630_s2, %s3228_s9, %s3223_s20, %s3223_s20, %s3222_s16  }
 0x112   : > { %s482_s30 = scalar_lea.vmem [#allocation16], %s2495_s24  ;;  %s479_s21 = scalar_lea.sflag [#allocation17], %s2489_s22 }
 0x113   : > { %s489_s29 = sshll.u32 %s482_s30, 4  ;;  %s2856_s29 = int_to_ptr.vmem [resolvable:$true] %s489_s29 }
 0x116   : > { %s3230_s27 = smov %s3229_s10  ;;  %s2853_s18 = scalar_lea.hbm %s3229_s10, %s2492_s23 }
 0x117   : > { %s2183_s6 = scalar_lea.hbm %s2853_s18, 1024  ;;  %s2188_s17 = scalar_lea.hbm %s3230_s27, 10240 }
 0x118   : > { %p2184_p5 = scmp.ne.s32.totalorder %s2853_s18, %s2183_s6  ;;  %p2189_p2 = scmp.lt.u32.totalorder %s2853_s18, %s3230_s27 }
 0x119   : > { %p2190_p13 = scmp.lt.u32.totalorder %s2188_s17, %s2183_s6  ;;  %p2192_p8 = scmp.lt.u32.totalorder %s2183_s6, %s2853_s18 }
 0x11a   : > { %p2186_p3 = pnand %p2184_p5, %p3220_p12 }
 0x11b   : > { %p2191_p6 = por %p2190_p13, %p2189_p2 }
 0x11c   : > { %p2187_p9 = pneg %p2186_p3 }
 0x11d   : > { %p2193_p10 = por %p2192_p8, %p2191_p6 }
 0x11f   : > { %p2194_p0 = pnand %p2193_p10, %p2187_p9 }
 0x121   : > { %2197 = shalt.err (!%p2194_p0)
}
 0x122   : > { %s2198_s24 = scalar_lea.vmem %s2856_s29, 1024  ;;  %s2367_s9 = smov [#allocation16]  }
 0x123   : > { %p2199_p11 = scmp.ne.s32.totalorder %s2856_s29, %s2198_s24  ;;  %s2203_s8 = sshll.u32 %s2367_s9, 4  ;;  %s2204_s8 = int_to_ptr.vmem [resolvable:$false] %s2203_s8 }
 0x124   : > { %s2205_s5 = scalar_lea.vmem %s2204_s8, 2048  ;;  %p2206_p5 = scmp.lt.s32.totalorder %s2856_s29, %s2204_s8 }
 0x125   : > { %p2201_p7 = pnand %p2199_p11, %p3220_p12  ;;  %p2207_p3 = scmp.lt.s32.totalorder %s2205_s5, %s2198_s24 }
 0x127   : > { %p2202_p1 = pneg %p2201_p7  ;;  %p2208_p2 = por %p2207_p3, %p2206_p5 }
 0x129   : > { %p2209_p13 = pnand %p2208_p2, %p2202_p1 }
 0x12b   : > { %2212 = shalt.err (!%p2209_p13)
}
 0x12c   : > { %1854 = dma.hbm_to_vmem [thread:$0]  (!%p3221_p4), %s2853_s18, 1024, %s2856_s29, %s479_s21, %s3223_s20, %s3223_s20, %s3222_s16  }
 0x12d   : > { %p3231_p12 = scmp.ne.s32.totalorder %s3200_s1, 0 }
 0x12e   : > { %p3232_p9 = scmp.eq.s32.totalorder (!%p3231_p12), %s2633_s26, 0 }
 0x12f   : > { %501 = sbr.rel (%p3231_p12) target bundleno = 845 (0x34d), region = 56 }
 0x136   : > { %2286 = dma.done.wait (%p3232_p9), [#allocation5], 32   ;;  %p3233_p6 = pmov %p3232_p9 }
 0x137   : > { %s3234_s25 = sld [smem:[#allocation34_spill]]  ;;  %s2892_s28 = sand.u32 1, %s2331_s13  }
 0x138   : > { %2288 = vsyncadd (%p3233_p6), [#allocation5], 4294967264  ;;  %s1490_s22 = sshll.u32 %s2892_s28, 3  ;;  %s508_s10 = scalar_lea.sflag [#allocation3], %s2892_s28 }
 0x139   : > { %s2898_s16 = scalar_lea.vmem [#allocation6], %s1490_s22 }
 0x13d   : > { %p3235_p4 = scmp.ne.s32.totalorder %s3234_s25, 0 }
 0x13f   : > { %2290 = dma.done.wait (%p3235_p4), %s508_s10, 128  }
 0x140   : > { %2292 = vsyncadd (%p3235_p4), %s508_s10, 4294967168  ;;  %s3236_s1 = sld [smem:[#allocation26_spill]]  ;;  %s3237_s20 = sld [smem:[#allocation32_spill]] }
 0x141   : > { %s516_s18 = sand.u32 1, %s2633_s26  }
 0x142   : > { %s517_s21 = scalar_lea.sflag [#allocation8], %s516_s18 }
 0x146   : > { %s518_s30 = sand.u32 1, %s3236_s1   ;;  %p3238_p8 = scmp.ne.s32.totalorder %s3237_s20, 0 }
 0x147   : > { %s1491_s29 = sshll.u32 %s518_s30, 6 }
 0x148   : > { %s2906_s6 = scalar_lea.vmem [#allocation7], %s1491_s29 }
 0x149   : > { %2294 = dma.done.wait (%p3238_p8), %s517_s21, 2048  }
 0x14a   : > { %2296 = vsyncadd (%p3238_p8), %s517_s21, 4294965248  ;;  %s2912_s15 = scalar_lea.vmem [#allocation9], %s1491_s29  ;;  %s535_s2 = scalar_lea.sflag [#allocation11], %s516_s18 }
 0x14b   : > { %s2914_s17 = scalar_lea.vmem [#allocation10], %s1491_s29 }
 0x14c   : > { %2298 = dma.done.wait (%p3238_p8), %s535_s2, 2048  }
 0x14d   : > { %2300 = vsyncadd (%p3238_p8), %s535_s2, 4294965248  ;;  %s1495_s26 = sshll.u32 %s518_s30, 7  ;;  %s2920_s23 = scalar_lea.vmem [#allocation12], %s1491_s29 }
 0x14e   : > { %s553_s11 = scalar_lea.sflag [#allocation14], %s516_s18  ;;  %s2922_s24 = scalar_lea.vmem [#allocation13], %s1495_s26 }
 0x14f   : > { %2302 = dma.done.wait (%p3238_p8), %s553_s11, 4096  }
 0x150   : > { %2304 = vsyncadd (%p3238_p8), %s553_s11, 4294963200  ;;  %s2928_s9 = scalar_lea.vmem [#allocation15], %s1495_s26  ;;  %s571_s8 = scalar_lea.sflag [#allocation17], %s518_s30 }
 0x151   : > { %s2930_s5 = scalar_lea.vmem [#allocation16], %s1491_s29 }
 0x152   : > { %2306 = dma.done.wait (%p3238_p8), %s571_s8, 1024  }
 0x153   : > { %2308 = vsyncadd (%p3238_p8), %s571_s8, 4294966272 }
 0x154   : > { %579 = sfence }
 0x155   : > { %v646_v0 = vld [vmem:[%s2906_s6] sm:$0xff]  ;;  %v647_v1 = vld [vmem:[%s2906_s6 + $0x8] sm:$0xff]  ;;  %v2368_v3 = vmov 0.0|0.0   ;;  %v648_v6 = vld [vmem:[%s2906_s6 + $0x10] sm:$0xff]  ;;  %vm2369_vm0 = vmmov 0   ;;  %v2370_v11 = vmov 0.0  }
 0x156   : > { %v728_v2 = vld [vmem:[%s2912_s15] sm:$0xff]  ;;  %1717 = vmatprep.subr.bf16.mxu0 %v2368_v3  ;;  %v1718_v4 = vpack.c.bf16 %v647_v1, %v646_v0  ;;  %1729 = vmatprep.subr.bf16.mxu1 %v2368_v3  ;;  %v729_v5 = vld [vmem:[%s2912_s15 + $0x8] sm:$0xff]  ;;  %v649_v7 = vld [vmem:[%s2906_s6 + $0x18] sm:$0xff]  ;;  %vm654_vm1 = vcmask 523264   ;;  %s3239_s25 = sld [smem:[#allocation28_spill]]  ;;  %s3240_s10 = sld [smem:[#allocation29_spill]] }
 0x157   : > { %v1730_v8 = vpack.c.bf16 %v729_v5, %v728_v2  ;;  %v730_v9 = vld [vmem:[%s2912_s15 + $0x10] sm:$0xff]  ;;  %v731_v10 = vld [vmem:[%s2912_s15 + $0x18] sm:$0xff]  ;;  %1606 = vmatprep.mubr.msk.f32.mxu0 %vm2369_vm0, %v2370_v11  ;;  %1625 = vmatprep.mubr.msk.f32.mxu1 %vm2369_vm0, %v2370_v11  ;;  %v1721_v12 = vpack.c.bf16 %v649_v7, %v648_v6  ;;  %v650_v14 = vld [vmem:[%s2906_s6 + $0x20] sm:$0xff]  ;;  %s644_s21 = scalar_lea.vmem [#allocation18], %s1490_s22 }
 0x158   : > { %1719 = vmatpush3.bf16.msra.mxu0 %v1718_v4  ;;  %v1733_v13 = vpack.c.bf16 %v731_v10, %v730_v9  ;;  %v651_v15 = vld [vmem:[%s2906_s6 + $0x28] sm:$0xff]  ;;  %v732_v16 = vld [vmem:[%s2912_s15 + $0x20] sm:$0xff]  ;;  %v652_v20 = vld [vmem:[%s2906_s6 + $0x30] sm:$0xff] }
 0x159   : > { %1731 = vmatpush3.bf16.msra.mxu1 %v1730_v8  ;;  %1720 = vmatprep.subr.bf16.mxu0 %v2368_v3  ;;  %v733_v17 = vld [vmem:[%s2912_s15 + $0x28] sm:$0xff]  ;;  %v1724_v18 = vpack.c.bf16 %v651_v15, %v650_v14  ;;  %v653_v21 = vld [vmem:[%s2906_s6 + $0x38] sm:$0xff]  ;;  %v734_v22 = vld [vmem:[%s2912_s15 + $0x30] sm:$0xff] }
 0x15a   : > { %1732 = vmatprep.subr.bf16.mxu1 %v2368_v3  ;;  %v1736_v19 = vpack.c.bf16 %v733_v17, %v732_v16  ;;  %v735_v23 = vld [vmem:[%s2912_s15 + $0x38] sm:$0xff]  ;;  %v1727_v24 = vpack.c.bf16 %v653_v21, %v652_v20  ;;  %v932_v26 = vld [vmem:[%s2922_s24] sm:$0xff]  ;;  %v933_v27 = vld [vmem:[%s2922_s24 + $0x8] sm:$0xff] }
 0x15b   : > { %v1739_v25 = vpack.c.bf16 %v735_v23, %v734_v22  ;;  %v948_v28 = vld [vmem:[%s2928_s9] sm:$0xff]  ;;  %v949_v29 = vld [vmem:[%s2928_s9 + $0x8] sm:$0xff]  ;;  %v2969_v30 = vld [vmem:[%s2898_s16] sm:$0xff]  ;;  %v1766_v31 = vpack.c.bf16 %v933_v27, %v932_v26 }
 0x15c   : > { %1722 = vmatpush3.bf16.msra.mxu0 %v1721_v12  ;;  %v1742_v32 = vpack.c.bf16 %v949_v29, %v948_v28  ;;  %v934_v33 = vld [vmem:[%s2922_s24 + $0x10] sm:$0xff]  ;;  %v935_v34 = vld [vmem:[%s2922_s24 + $0x18] sm:$0xff]  ;;  %v936_v39 = vld [vmem:[%s2922_s24 + $0x20] sm:$0xff]  ;;  %s1183_s16 = sshra.s32 %s3239_s25, 7  ;;  %s1188_s18 = sand.u32 127, %s3239_s25 }
 0x15d   : > { %1734 = vmatpush3.bf16.msra.mxu1 %v1733_v13  ;;  %1723 = vmatprep.subr.bf16.mxu0 %v2368_v3  ;;  %v950_v35 = vld [vmem:[%s2928_s9 + $0x10] sm:$0xff]  ;;  %v951_v36 = vld [vmem:[%s2928_s9 + $0x18] sm:$0xff]  ;;  %v1769_v37 = vpack.c.bf16 %v935_v34, %v934_v33  ;;  %v937_v40 = vld [vmem:[%s2922_s24 + $0x28] sm:$0xff]  ;;  %v807_v13 = vlaneseq  ;;  %s1185_s1 = sadd.s32 %s3240_s10, %s1183_s16  ;;  %p1517_p10 = scmp.ne.s32.totalorder %s3239_s25, 0 }
 0x15e   : > { %1735 = vmatprep.subr.bf16.mxu1 %v2368_v3  ;;  %v1745_v38 = vpack.c.bf16 %v951_v36, %v950_v35  ;;  %v952_v41 = vld [vmem:[%s2928_s9 + $0x20] sm:$0xff]  ;;  %v953_v42 = vld [vmem:[%s2928_s9 + $0x28] sm:$0xff]  ;;  %v1772_v43 = vpack.c.bf16 %v937_v40, %v936_v39  ;;  %v938_v45 = vld [vmem:[%s2922_s24 + $0x30] sm:$0xff]  ;;  %s1516_s20 = sshll.u32 %s1185_s1, 7 }
 0x15f   : > { %v1748_v44 = vpack.c.bf16 %v953_v42, %v952_v41  ;;  %v939_v46 = vld [vmem:[%s2922_s24 + $0x38] sm:$0xff]  ;;  %v954_v48 = vld [vmem:[%s2928_s9 + $0x30] sm:$0xff]  ;;  %v940_v51 = vld [vmem:[%s2922_s24 + $0x40] sm:$0xff]  ;;  %v808_v14 = vshrl.u32 %v807_v13, 7  ;;  %s1189_s30 = sadd.s32 %s1516_s20, %s1188_s18 }
 0x160   : > { %1725 = vmatpush3.bf16.msra.mxu0 %v1724_v18  ;;  %v1775_v47 = vpack.c.bf16 %v939_v46, %v938_v45  ;;  %v955_v49 = vld [vmem:[%s2928_s9 + $0x38] sm:$0xff]  ;;  %v941_v52 = vld [vmem:[%s2922_s24 + $0x48] sm:$0xff]  ;;  %v956_v54 = vld [vmem:[%s2928_s9 + $0x40] sm:$0xff]  ;;  %s1190_s29 = sld [smem:[#allocation2 + %s1189_s30]] }
 0x161   : > { %1737 = vmatpush3.bf16.msra.mxu1 %v1736_v19  ;;  %1726 = vmatprep.subr.bf16.mxu0 %v2368_v3  ;;  %v1751_v50 = vpack.c.bf16 %v955_v49, %v954_v48  ;;  %v1778_v53 = vpack.c.bf16 %v941_v52, %v940_v51  ;;  %v957_v55 = vld [vmem:[%s2928_s9 + $0x48] sm:$0xff]  ;;  %v942_v56 = vld [vmem:[%s2922_s24 + $0x50] sm:$0xff]  ;;  %v943_v58 = vld [vmem:[%s2922_s24 + $0x58] sm:$0xff]  ;;  %v809_v15 = vsub.s32 0, %v808_v14  ;;  %v824_v16 = vsub.s32 1, %v808_v14 }
 0x162   : > { %1738 = vmatprep.subr.bf16.mxu1 %v2368_v3  ;;  %v1754_v57 = vpack.c.bf16 %v957_v55, %v956_v54  ;;  %v958_v59 = vld [vmem:[%s2928_s9 + $0x50] sm:$0xff]  ;;  %v959_v60 = vld [vmem:[%s2928_s9 + $0x58] sm:$0xff]  ;;  %v1781_v61 = vpack.c.bf16 %v943_v58, %v942_v56  ;;  %v944_v62 = vld [vmem:[%s2922_s24 + $0x60] sm:$0xff]  ;;  %v840_v17 = vsub.s32 2, %v808_v14  ;;  %v856_v18 = vsub.s32 3, %v808_v14 }
 0x163   : > { %v945_v63 = vld [vmem:[%s2922_s24 + $0x68] sm:$0xff]  ;;  %v1757_v0 = vpack.c.bf16 %v959_v60, %v958_v59  ;;  %v960_v2 = vld [vmem:[%s2928_s9 + $0x60] sm:$0xff]  ;;  %v946_v5 = vld [vmem:[%s2922_s24 + $0x70] sm:$0xff]  ;;  %v872_v22 = vsub.s32 4, %v808_v14  ;;  %v888_v29 = vsub.s32 5, %v808_v14 }
 0x164   : > { %1728 = vmatpush3.bf16.msra.mxu0 %v1727_v24  ;;  %v1784_v1 = vpack.c.bf16 %v945_v63, %v944_v62  ;;  %v961_v4 = vld [vmem:[%s2928_s9 + $0x68] sm:$0xff]  ;;  %v947_v6 = vld [vmem:[%s2922_s24 + $0x78] sm:$0xff]  ;;  %v962_v9 = vld [vmem:[%s2928_s9 + $0x70] sm:$0xff] }
 0x165   : > { %1740 = vmatpush3.bf16.msra.mxu1 %v1739_v25  ;;  %1765 = vmatprep.subr.bf16.mxu0 %v2368_v3  ;;  %v1760_v7 = vpack.c.bf16 %v961_v4, %v960_v2  ;;  %v1787_v8 = vpack.c.bf16 %v947_v6, %v946_v5  ;;  %v963_v10 = vld [vmem:[%s2928_s9 + $0x78] sm:$0xff]  ;;  %v806_v20 = vld [vmem:[%s2914_s17] sm:$0xff]  ;;  %v1501_v21 = vld [vmem:[%s2914_s17 + $0x8] sm:$0xff] }
 0x166   : > { %1741 = vmatprep.subr.bf16.mxu1 %v2368_v3  ;;  %v1763_v12 = vpack.c.bf16 %v963_v10, %v962_v9  ;;  %v1503_v28 = vld [vmem:[%s2914_s17 + $0x10] sm:$0xff]  ;;  %v813_v36 = vld [vmem:[%s2920_s23] sm:$0xff]  ;;  %v1505_v41 = vld [vmem:[%s2914_s17 + $0x18] sm:$0xff] }
 0x167   : > { %1607 = vmatmul.mubr.msk.f32.vlgmr.msra.gmra.mrb[0].mxu0 %vm654_vm1, %v2969_v30  ;;  %v1507_v46 = vld [vmem:[%s2914_s17 + $0x20] sm:$0xff]  ;;  %v1512_v9 = vld [vmem:[%s2920_s23 + $0x30] sm:$0xff] }
 0x168   : > { %1626 = vmatmul.mubr.msk.f32.vlgmr.msra.gmra.mrb[0].mxu1 %vm654_vm1, %v2969_v30  ;;  %1767 = vmatpush3.bf16.msra.mxu0 %v1766_v31  ;;  %v1508_v55 = vld [vmem:[%s2920_s23 + $0x20] sm:$0xff] }
 0x169   : > { %1743 = vmatpush3.bf16.msra.mxu1 %v1742_v32  ;;  %1768 = vmatprep.subr.bf16.mxu0 %v2368_v3 }
 0x16a   : > { %1744 = vmatprep.subr.bf16.mxu1 %v2368_v3  ;;  %1695 = vmatprep.mubr.msk.f32.mxu0 %vm2369_vm0, %v2370_v11 }
 0x16b   : > { %1660 = vmatprep.mubr.msk.f32.mxu1 %vm2369_vm0, %v2370_v11 }
 0x16c   : > { %1770 = vmatpush3.bf16.msra.mxu0 %v1769_v37  ;;  %v1502_v37 = vld [vmem:[%s2920_s23 + $0x8] sm:$0xff] }
 0x16d   : > { %1746 = vmatpush3.bf16.msra.mxu1 %v1745_v38  ;;  %1771 = vmatprep.subr.bf16.mxu0 %v2368_v3  ;;  %v1504_v38 = vld [vmem:[%s2920_s23 + $0x10] sm:$0xff] }
 0x16e   : > { %1747 = vmatprep.subr.bf16.mxu1 %v2368_v3 }
 0x170   : > { %1773 = vmatpush3.bf16.msra.mxu0 %v1772_v43 }
 0x171   : > { %1749 = vmatpush3.bf16.msra.mxu1 %v1748_v44  ;;  %1774 = vmatprep.subr.bf16.mxu0 %v2368_v3  ;;  %v904_v44 = vsub.s32 6, %v808_v14 }
 0x172   : > { %1750 = vmatprep.subr.bf16.mxu1 %v2368_v3 }
 0x174   : > { %1776 = vmatpush3.bf16.msra.mxu0 %v1775_v47 }
 0x175   : > { %1777 = vmatprep.subr.bf16.mxu0 %v2368_v3  ;;  %1752 = vmatpush3.bf16.msra.mxu1 %v1751_v50  ;;  %v1506_v50 = vld [vmem:[%s2920_s23 + $0x18] sm:$0xff] }
 0x176   : > { %1753 = vmatprep.subr.bf16.mxu1 %v2368_v3 }
 0x178   : > { %1779 = vmatpush3.bf16.msra.mxu0 %v1778_v53  ;;  %v920_v53 = vsub.s32 7, %v808_v14 }
 0x179   : > { %1780 = vmatprep.subr.bf16.mxu0 %v2368_v3  ;;  %1755 = vmatpush3.bf16.msra.mxu1 %v1754_v57  ;;  %v1509_v57 = vld [vmem:[%s2914_s17 + $0x28] sm:$0xff] }
 0x17a   : > { %1756 = vmatprep.subr.bf16.mxu1 %v2368_v3 }
 0x17c   : > { %1782 = vmatpush3.bf16.msra.mxu0 %v1781_v61 }
 0x17d   : > { %1783 = vmatprep.subr.bf16.mxu0 %v2368_v3  ;;  %1758 = vmatpush3.bf16.msra.mxu1 %v1757_v0  ;;  %v1510_v0 = vld [vmem:[%s2920_s23 + $0x28] sm:$0xff] }
 0x17e   : > { %1759 = vmatprep.subr.bf16.mxu1 %v2368_v3 }
 0x180   : > { %1785 = vmatpush3.bf16.msra.mxu0 %v1784_v1 }
 0x181   : > { %1786 = vmatprep.subr.bf16.mxu0 %v2368_v3  ;;  %1761 = vmatpush3.bf16.msra.mxu1 %v1760_v7  ;;  %v1511_v7 = vld [vmem:[%s2914_s17 + $0x30] sm:$0xff] }
 0x182   : > { %1762 = vmatprep.subr.bf16.mxu1 %v2368_v3 }
 0x184   : > { %1788 = vmatpush3.bf16.msra.mxu0 %v1787_v8 }
 0x185   : > { %1789 = vmatprep.subr.bf16.mxu0 %v2368_v3  ;;  %1764 = vmatpush3.bf16.msra.mxu1 %v1763_v12 }
 0x23a   : > { %v724_v19 = vpop.f32.mrb[0].mxu0 }
 0x23b   : > { %v810_v23 = vrot.slane %v724_v19, %v809_v15  ;;  %v825_v24 = vrot.slane %v724_v19, %v824_v16  ;;  %v841_v25 = vrot.slane %v724_v19, %v840_v17  ;;  %v1608_v26 = vpop.f32.mrb[1].mxu0  ;;  %v802_v27 = vpop.f32.mrb[0].mxu1  ;;  %v857_v35 = vrot.slane %v724_v19, %v856_v18 }
 0x23c   : > { %v817_v31 = vrot.slane %v802_v27, %v809_v15  ;;  %v833_v32 = vrot.slane %v802_v27, %v824_v16  ;;  %v849_v33 = vrot.slane %v802_v27, %v840_v17  ;;  %v1627_v34 = vpop.f32.mrb[1].mxu1  ;;  %v873_v43 = vrot.slane %v724_v19, %v872_v22  ;;  %v1513_v15 = vld [vmem:[%s2914_s17 + $0x38] sm:$0xff] }
 0x23d   : > { %v811_v39 = vmul.f32 %v810_v23, %v806_v20  ;;  %v826_v40 = vmul.f32 %v1501_v21, %v825_v24  ;;  %v842_v42 = vmul.f32 %v1503_v28, %v841_v25  ;;  %v858_v51 = vmul.f32 %v1505_v41, %v857_v35  ;;  %v1514_v16 = vld [vmem:[%s2920_s23 + $0x38] sm:$0xff]  ;;  %v1104_v20 = vld [vmem:[%s2930_s5] sm:$0xff]  ;;  %v1105_v21 = vld [vmem:[%s2930_s5 + $0x8] sm:$0xff] }
 0x23e   : > { %v818_v47 = vmul.f32 %v817_v31, %v813_v36  ;;  %v834_v48 = vmul.f32 %v1502_v37, %v833_v32  ;;  %v850_v49 = vmul.f32 %v1504_v38, %v849_v33  ;;  %v889_v52 = vrot.slane %v724_v19, %v888_v29  ;;  %v1106_v31 = vld [vmem:[%s2930_s5 + $0x10] sm:$0xff]  ;;  %v1107_v32 = vld [vmem:[%s2930_s5 + $0x18] sm:$0xff]  ;;  %v1108_v35 = vld [vmem:[%s2930_s5 + $0x20] sm:$0xff] }
 0x23f   : > { %v827_v45 = vadd.f32 %v826_v40, %v811_v39  ;;  %v865_v54 = vrot.slane %v802_v27, %v856_v18  ;;  %v881_v59 = vrot.slane %v802_v27, %v872_v22  ;;  %v897_v60 = vrot.slane %v802_v27, %v888_v29  ;;  %v1109_v36 = vld [vmem:[%s2930_s5 + $0x28] sm:$0xff]  ;;  %v1110_v38 = vld [vmem:[%s2930_s5 + $0x30] sm:$0xff]  ;;  %v1111_v39 = vld [vmem:[%s2930_s5 + $0x38] sm:$0xff] }
 0x240   : > { %v835_v58 = vadd.f32 %v834_v48, %v818_v47  ;;  %v874_v61 = vmul.f32 %v1507_v46, %v873_v43  ;;  %v905_v62 = vrot.slane %v724_v19, %v904_v44  ;;  %v913_v5 = vrot.slane %v802_v27, %v904_v44 }
 0x241   : > { %v843_v56 = vadd.f32 %v842_v42, %v827_v45  ;;  %v866_v63 = vmul.f32 %v1506_v50, %v865_v54  ;;  %v882_v4 = vmul.f32 %v1508_v55, %v881_v59  ;;  %v890_v6 = vmul.f32 %v1509_v57, %v889_v52 }
 0x242   : > { %v851_v2 = vadd.f32 %v850_v49, %v835_v58  ;;  %v921_v8 = vrot.slane %v724_v19, %v920_v53  ;;  %v898_v13 = vmul.f32 %v1510_v0, %v897_v60  ;;  %v929_v14 = vrot.slane %v802_v27, %v920_v53 }
 0x243   : > { %v859_v1 = vadd.f32 %v858_v51, %v843_v56  ;;  %v906_v18 = vmul.f32 %v1511_v7, %v905_v62  ;;  %v914_v23 = vmul.f32 %v1512_v9, %v913_v5  ;;  %v1790_v28 = vpack.c.bf16 %v1105_v21, %v1104_v20 }
 0x244   : > { %v867_v12 = vadd.f32 %v866_v63, %v851_v2  ;;  %v922_v25 = vmul.f32 %v1513_v15, %v921_v8  ;;  %v930_v26 = vmul.f32 %v1514_v16, %v929_v14  ;;  %v1793_v34 = vpack.c.bf16 %v1107_v32, %v1106_v31 }
 0x245   : > { %v875_v10 = vadd.f32 %v874_v61, %v859_v1  ;;  %v1796_v37 = vpack.c.bf16 %v1109_v36, %v1108_v35  ;;  %v1799_v40 = vpack.c.bf16 %v1111_v39, %v1110_v38 }
 0x246   : > { %v883_v22 = vadd.f32 %v882_v4, %v867_v12 }
 0x247   : > { %v891_v17 = vadd.f32 %v890_v6, %v875_v10 }
 0x248   : > { %v899_v19 = vadd.f32 %v898_v13, %v883_v22 }
 0x249   : > { %v907_v24 = vadd.f32 %v906_v18, %v891_v17 }
 0x24a   : > { %v915_v27 = vadd.f32 %v914_v23, %v899_v19 }
 0x24b   : > { %v923_v29 = vadd.f32 %v922_v25, %v907_v24 }
 0x24c   : > { %v931_v33 = vadd.f32 %v930_v26, %v915_v27 }
 0x24d   : > { %1696 = vmatmul.mubr.f32.vlgmr.msra.gmra.mrb[2].mxu0 %v923_v29 }
 0x24e   : > { %1791 = vmatpush3.bf16.msra.mxu0 %v1790_v28  ;;  %1714 = vmatprep.mubr.msk.f32.mxu0 %vm2369_vm0, %v2370_v11 }
 0x24f   : > { %1661 = vmatmul.mubr.f32.vlgmr.msra.gmra.mrb[2].mxu1 %v931_v33  ;;  %1792 = vmatprep.subr.bf16.mxu0 %v2368_v3 }
 0x252   : > { %1794 = vmatpush3.bf16.msra.mxu0 %v1793_v34 }
 0x253   : > { %1795 = vmatprep.subr.bf16.mxu0 %v2368_v3 }
 0x256   : > { %1797 = vmatpush3.bf16.msra.mxu0 %v1796_v37 }
 0x257   : > { %1798 = vmatprep.subr.bf16.mxu0 %v2368_v3  ;;  %v2371_v3 = vmov (!%p1517_p10), 0.0  }
 0x258   : > { %1195 = vst.msk [vmem:[%s644_s21] sm:$0xff] (!%p1517_p10), %vm654_vm1, %v2371_v3 }
 0x25a   : > { %1800 = vmatpush3.bf16.msra.mxu0 %v1799_v40 }
 0x25d   : > { %1715 = vmatmul.mubr.msk.f32.vlgmr.msra.gmra.mrb[2].mxu0 %vm654_vm1, %v2969_v30 }
 0x322   : > { %v1030_v11 = vpop.f32.mrb[2].mxu1 }
 0x323   : > { %v1662_v41 = vpop.f32.mrb[3].mxu1 }
 0x32b   : > { %1194 = sbr.rel (%p1517_p10) target bundleno = 818 (0x332), region = 96 }
 0x330   : > { %v1178_v42 = vpop.f32.mrb[2].mxu0 }
 0x331   : > { %v1801_v43 = vadd.f32 %v1178_v42, %v1030_v11  ;;  %v1716_v44 = vpop.f32.mrb[3].mxu0 }
 0x332 PF: > { %v1196_v30 = vld [vmem:[%s644_s21] sm:$0xff]  ;;  %s3241_s6 = sld [smem:[#allocation29_spill]]  ;;  %v1197_v45 = vstv %s1190_s29  ;;  %s1215_s2 = sshll.u32 %s644_s21, 4  ;;  %s3068_s2 = int_to_ptr.vmem [resolvable:$true] %s1215_s2 }
 0x333   : > { %v1198_v46 = vmul.f32 %v1801_v43, %v1197_v45  ;;  %s3242_s23 = sld [smem:[#allocation46_spill]]  ;;  %s1202_s11 = scalar_lea.sflag [#allocation4], %s2892_s28 }
 0x334   : > { %s2213_s24 = scalar_lea.vmem %s3068_s2, 128  ;;  %p3243_p11 = scmp.ne.s32.totalorder %s3211_s0, 0 }
 0x335   : > { %v1199_v47 = vadd.f32 %v1198_v46, %v1196_v30  ;;  %p2214_p0 = scmp.ne.s32.totalorder %s3068_s2, %s2213_s24  ;;  %s2372_s9 = smov [#allocation18]  }
 0x336   : > { %s2217_s8 = sshll.u32 %s2372_s9, 4  ;;  %s2218_s8 = int_to_ptr.vmem [resolvable:$false] %s2217_s8 }
 0x337   : > { %1200 = vst.msk [vmem:[%s644_s21] sm:$0xff] %vm654_vm1, %v1199_v47  ;;  %p2215_p7 = pnand %p2214_p0, %p3243_p11  ;;  %s2219_s5 = scalar_lea.vmem %s2218_s8, 256 }
 0x338   : > { %s1519_s15 = sshll.u32 %s3241_s6, 7  ;;  %p2220_p5 = scmp.lt.s32.totalorder %s3068_s2, %s2218_s8 }
 0x339   : > { %s3066_s22 = scalar_lea.hbm %s3242_s23, %s1519_s15  ;;  %p2216_p1 = pneg %p2215_p7 }
 0x33a   : > { %p2221_p3 = scmp.lt.s32.totalorder %s2219_s5, %s2213_s24 }
 0x33c   : > { %p2222_p2 = por %p2221_p3, %p2220_p5 }
 0x33e   : > { %p2223_p13 = pnand %p2222_p2, %p2216_p1 }
 0x340   : > { %2226 = shalt.err (!%p2223_p13)
}
 0x341   : > { %s2227_s28 = scalar_lea.hbm %s3066_s22, 128  ;;  %s2231_s16 = scalar_lea.hbm %s3242_s23, 256 }
 0x342   : > { %p2228_p12 = scmp.ne.s32.totalorder %s3066_s22, %s2227_s28  ;;  %p2232_p4 = scmp.lt.u32.totalorder %s3066_s22, %s3242_s23 }
 0x343   : > { %p2233_p8 = scmp.lt.u32.totalorder %s2231_s16, %s2227_s28  ;;  %p2235_p0 = scmp.lt.u32.totalorder %s2227_s28, %s3066_s22 }
 0x344   : > { %p2229_p9 = pnand %p2228_p12, %p3243_p11 }
 0x345   : > { %p2234_p10 = por %p2233_p8, %p2232_p4 }
 0x346   : > { %p2230_p6 = pneg %p2229_p9 }
 0x347   : > { %p2236_p7 = por %p2235_p0, %p2234_p10 }
 0x349   : > { %p2237_p1 = pnand %p2236_p7, %p2230_p6 }
 0x34b   : > { %2240 = shalt.err (!%p2237_p1)
}
 0x34c   : > { %1824 = dma.vmem_to_hbm [thread:$0]  (%p3243_p11), %s3068_s2, 128, %s3066_s22, %s1202_s11  }
 0x34d PF: > { %p1862_p5 = scmp.ge.s32.totalorder %s2355_s19, 2  ;;  %s1227_s18 = sand.u32 1, %s2327_s12  }
 0x34e   : > { %p3244_p3 = scmp.ne.s32.totalorder %s3213_s4, 0  ;;  %s1228_s30 = scalar_lea.sflag [#allocation4], %s1227_s18 }
 0x350   : > { %p1856_p2 = pnand %p1862_p5, %p3244_p3 }
 0x352   : > { %2310 = dma.done.wait (!%p1856_p2), %s1228_s30, 128  }
 0x353   : > { %2312 = vsyncadd (!%p1856_p2), %s1228_s30, 4294967168  ;;  %s38_s19 = sadd.s32 1, %s2355_s19   ;;  %s3245_s30 = sld [smem:[#allocation26_spill]] }
 0x354   : > { %p35_p13 = scmp.ge.s32.totalorder %s38_s19, 22   ;;  %s3246_s10 = sld [smem:[#allocation27_spill]] }
 0x355   : > { %s3247_s11 = sld [smem:[#allocation36_spill]]  ;;  %s3248_s0 = sld [smem:[#allocation37_spill]] }
 0x356   : > { %s3249_s15 = sld [smem:[#allocation30_spill]]  ;;  %s3250_s16 = sld [smem:[#allocation31_spill]] }
 0x357   : > { %s3251_s17 = sld [smem:[#allocation33_spill]]  ;;  %s3252_s18 = sld [smem:[#allocation35_spill]] }
 0x358   : > { %s3253_s12 = smov %s2331_s13  ;;  %s3254_s13 = smov %s2335_s14 }
 0x359   :  { %37 = sbr.rel (!%p35_p13) target bundleno = 28 (0x1c), region = 209 }
 0x35b   : > { %s3255_s14 = smov %s3248_s0 }
 0x360   :  { %1233 = vsyncpa [#allocation3], 1 }
 0x361   :  { %1235 = vsyncpa [#allocation3 + $0x1], 1 }
 0x362   :  { %1236 = vsyncpa [#allocation8], 1 }
 0x363   :  { %1238 = vsyncpa [#allocation8 + $0x1], 1 }
 0x364   :  { %1239 = vsyncpa [#allocation11], 1 }
 0x365   :  { %1241 = vsyncpa [#allocation11 + $0x1], 1 }
 0x366   :  { %1242 = vsyncpa [#allocation14], 1 }
 0x367   :  { %1244 = vsyncpa [#allocation14 + $0x1], 1 }
 0x368   :  { %1245 = vsyncpa [#allocation17], 1 }
 0x369   :  { %1247 = vsyncpa [#allocation17 + $0x1], 1 }
 0x36a   :  { %1248 = vsyncpa [#allocation4], 1 }
 0x36b   :  { %1250 = vsyncpa [#allocation4 + $0x1], 1 }
 0x36c   :  { %1251 = vsyncpa [#allocation5], 1 }
 0x36d   :  { %1253 = vsyncpa [#allocation5 + $0x1], 1 }

</bundles_post_ra>
